<compile_context>
chip_gen: v7x
topology: tpu7x:2x2x1
jax: 0.10.0
libtpu: 0.0.40
codegen_flags: <defaults>
</compile_context>

<pallas_src>
import jax
import jax.numpy as jnp
from jax import lax
from jax.experimental import pallas as pl
from jax.experimental.pallas import tpu as pltpu

ALPH = 'abcdefghijklmnoprstuwvxyzABCDEFGHIJKLMNOPRSTUWVXYZ'


def lstm_tagger_forward(emb_w, emb_ch, word_lens, params):
    S, E = emb_w.shape
    _, L, _ = emb_ch.shape
    H = params['w_hh_w'].shape[0]
    T = params['w2t_w'].shape[1]
    SP = ((S + 7) // 8) * 8          # pad word axis to a full 8-sublane batch
    TP = 128                         # lane-dense tag axis (padded cols masked via -1e9 bias)
    G4 = 4 * H

    # ---- host-side layout plumbing only (padding / transpose, no hot compute) ----
    emb_w_p = jnp.zeros((SP, E), jnp.float32).at[:S].set(emb_w)
    # (S,L,E) -> (L,S,E) -> pad to (L,SP,E) -> flatten to (L*SP,E): row t*SP+e = char t of word e
    emb_ch_p = (jnp.zeros((L, SP, E), jnp.float32)
                .at[:, :S].set(jnp.transpose(emb_ch, (1, 0, 2)))
                .reshape(L * SP, E))
    lens_col = jnp.zeros((SP, 1), jnp.int32).at[:S, 0].set(word_lens.astype(jnp.int32))
    max_len = jnp.max(word_lens).astype(jnp.int32).reshape(1)

    def pad_tag_w(w):
        return jnp.zeros((H, TP), jnp.float32).at[:, :T].set(w)

    w2t_w_p = pad_tag_w(params['w2t_w'])
    w2t_c_p = pad_tag_w(params['w2t_c'])
    b2t_w_p = jnp.full((1, TP), -1e9, jnp.float32).at[:, :T].set(params['b2t_w'])
    b2t_c_p = jnp.zeros((1, TP), jnp.float32).at[:, :T].set(params['b2t_c'])

    def kernel(max_len_ref,                                 # SMEM (1,) int32   [scalar prefetch]
               lens_ref,                                    # (SP, 1) int32
               emb_w_ref,                                   # (SP, E)
               emb_ch_ref,                                  # (L*SP, E)
               w_ih_w_ref, w_hh_w_ref, b_w_ref,             # word LSTM
               w2t_w_ref, b2t_w_ref,                        # hidden_w2tag (tag dim padded)
               w_ih_c_ref, w_hh_c_ref, b_c_ref,             # char LSTM
               w2t_c_ref, b2t_c_ref,                        # hidden_ch2tag (tag dim padded)
               out_ref,                                     # (SP, TP)
               hseq_ref, xc_ref, hch_ref, cch_ref, sch_ref):
        # ---- hoisted input projections: one sublane-dense GEMM per LSTM (bias folded in) ----
        xw = jnp.dot(emb_w_ref[...], w_ih_w_ref[...],
                     preferred_element_type=jnp.float32) + b_w_ref[...]             # (SP, 4H)
        xc_ref[...] = jnp.dot(emb_ch_ref[...], w_ih_c_ref[...],
                              preferred_element_type=jnp.float32) + b_c_ref[...]    # (L*SP, 4H)

        def cell(x_proj, h, c, w_hh):
            gates = x_proj + jnp.dot(h, w_hh, preferred_element_type=jnp.float32)
            i = jax.nn.sigmoid(gates[:, 0:H])
            f = jax.nn.sigmoid(gates[:, H:2 * H])
            g = jnp.tanh(gates[:, 2 * H:3 * H])
            o = jax.nn.sigmoid(gates[:, 3 * H:4 * H])
            c_new = f * c + i * g
            return o * jnp.tanh(c_new), c_new

        # ---- word LSTM: sequential over sentence positions (batch 1), only h @ W_hh per step ----
        hseq_ref[...] = jnp.zeros_like(hseq_ref)
        w_hh_w = w_hh_w_ref[...]
        h_w = jnp.zeros((1, H), jnp.float32)
        c_w = jnp.zeros((1, H), jnp.float32)
        for t in range(S):                                   # static unroll, S is small
            h_w, c_w = cell(xw[t:t + 1, :], h_w, c_w, w_hh_w)
            hseq_ref[t:t + 1, :] = h_w
        word_scores = jnp.dot(hseq_ref[...], w2t_w_ref[...],
                              preferred_element_type=jnp.float32) + b2t_w_ref[...]  # (SP, TP)

        # ---- char LSTM: all words advance together (8 sublanes / step),
        #      loop bounded by the longest word, per-word validity masks ----
        hch_ref[...] = jnp.zeros_like(hch_ref)
        cch_ref[...] = jnp.zeros_like(cch_ref)
        sch_ref[...] = jnp.zeros_like(sch_ref)
        w_hh_c = w_hh_c_ref[...]
        lens = lens_ref[...]                                 # (SP, 1) int32

        def char_body(t, carry):
            row = pl.multiple_of(t * SP, SP)                 # tile-aligned sublane slice
            h_n, c_n = cell(xc_ref[pl.ds(row, SP), :], hch_ref[...], cch_ref[...], w_hh_c)
            valid = t < lens                                 # (SP, 1) bool, per-word mask
            hch_ref[...] = jnp.where(valid, h_n, hch_ref[...])
            cch_ref[...] = jnp.where(valid, c_n, cch_ref[...])
            sch_ref[...] = sch_ref[...] + jnp.where(valid, h_n, 0.0)
            return carry

        lax.fori_loop(0, max_len_ref[0], char_body, 0)
        char_scores = jnp.dot(sch_ref[...], w2t_c_ref[...],
                              preferred_element_type=jnp.float32) + b2t_c_ref[...]  # (SP, TP)

        # ---- combine + log_softmax over the (padded) tag axis; pad cols hold -1e9 -> exp()==0 ----
        scores = word_scores + char_scores
        m = jnp.max(scores, axis=-1, keepdims=True)
        lse = m + jnp.log(jnp.sum(jnp.exp(scores - m), axis=-1, keepdims=True))
        out_ref[...] = scores - lse

    def full(shape):
        return pl.BlockSpec(shape, lambda i, ml, _n=len(shape): (0,) * _n)

    grid_spec = pltpu.PrefetchScalarGridSpec(
        num_scalar_prefetch=1,
        grid=(1,),                                  # single step: everything resident in VMEM
        in_specs=[
            full((SP, 1)), full((SP, E)), full((L * SP, E)),
            full((E, G4)), full((H, G4)), full((1, G4)),
            full((H, TP)), full((1, TP)),
            full((E, G4)), full((H, G4)), full((1, G4)),
            full((H, TP)), full((1, TP)),
        ],
        out_specs=pl.BlockSpec((SP, TP), lambda i, ml: (0, 0)),
        scratch_shapes=[
            pltpu.VMEM((SP, H), jnp.float32),        # word-LSTM hidden sequence
            pltpu.VMEM((L * SP, G4), jnp.float32),   # hoisted char input projections
            pltpu.VMEM((SP, H), jnp.float32),        # char h
            pltpu.VMEM((SP, H), jnp.float32),        # char c
            pltpu.VMEM((SP, H), jnp.float32),        # char hidden-state sum
        ],
    )
    out = pl.pallas_call(
        kernel,
        out_shape=jax.ShapeDtypeStruct((SP, TP), jnp.float32),
        grid_spec=grid_spec,
        compiler_params=pltpu.CompilerParams(dimension_semantics=("arbitrary",)),
    )(max_len, lens_col, emb_w_p, emb_ch_p,
      params['w_ih_w'], params['w_hh_w'], params['b_w'], w2t_w_p, b2t_w_p,
      params['w_ih_c'], params['w_hh_c'], params['b_c'], w2t_c_p, b2t_c_p)
    return out[:S, :T]


def init_params(key, vocab_size, char_vocab_size, E, H, T):
    ks = jax.random.split(key, 12)
    sl = float(H) ** -0.5

    def u(k, shape, scale):
        return jax.random.uniform(k, shape, jnp.float32, -scale, scale)

    return {
        'word_emb': jax.random.normal(ks[0], (vocab_size, E), jnp.float32),
        'char_emb': jax.random.normal(ks[1], (char_vocab_size, E), jnp.float32),
        'w_ih_w': u(ks[2], (E, 4 * H), sl),
        'w_hh_w': u(ks[3], (H, 4 * H), sl),
        'b_w':    u(ks[4], (1, 4 * H), sl),
        'w2t_w':  u(ks[5], (H, T), sl),
        'b2t_w':  u(ks[6], (1, T), sl),
        'w_ih_c': u(ks[7], (E, 4 * H), sl),
        'w_hh_c': u(ks[8], (H, 4 * H), sl),
        'b_c':    u(ks[9], (1, 4 * H), sl),
        'w2t_c':  u(ks[10], (H, T), sl),
        'b2t_c':  u(ks[11], (1, T), sl),
    }


def reference_forward(emb_w, emb_ch, word_lens, params):
    """Pure-JAX mirror of the PyTorch forward (highest-precision matmuls)."""
    S, E = emb_w.shape
    _, L, _ = emb_ch.shape
    H = params['w_hh_w'].shape[0]
    hp = jax.lax.Precision.HIGHEST

    def mm(a, b):
        return jnp.dot(a, b, precision=hp)

    def cell(x, h, c, wih, whh, b):
        g = mm(x, wih) + mm(h, whh) + b
        i = jax.nn.sigmoid(g[:, :H])
        f = jax.nn.sigmoid(g[:, H:2 * H])
        gg = jnp.tanh(g[:, 2 * H:3 * H])
        o = jax.nn.sigmoid(g[:, 3 * H:])
        c = f * c + i * gg
        h = o * jnp.tanh(c)
        return h, c

    h = jnp.zeros((1, H)); c = jnp.zeros((1, H))
    word_scores = []
    for t in range(S):
        h, c = cell(emb_w[t:t + 1], h, c,
                    params['w_ih_w'], params['w_hh_w'], params['b_w'])
        word_scores.append(mm(h, params['w2t_w']) + params['b2t_w'])
    word_scores = jnp.concatenate(word_scores, axis=0)

    char_scores = []
    for e in range(S):
        h = jnp.zeros((1, H)); c = jnp.zeros((1, H)); s = jnp.zeros((1, H))
        for t in range(L):
            hn, cn = cell(emb_ch[e, t:t + 1], h, c,
                          params['w_ih_c'], params['w_hh_c'], params['b_c'])
            valid = t < word_lens[e]
            h = jnp.where(valid, hn, h)
            c = jnp.where(valid, cn, c)
            s = s + jnp.where(valid, hn, 0.0)
        char_scores.append(mm(s, params['w2t_c']) + params['b2t_c'])
    char_scores = jnp.concatenate(char_scores, axis=0)

    return jax.nn.log_softmax(word_scores + char_scores, axis=1)


if __name__ == "__main__":
    VOCAB_SIZE = 12
    CHAR_VOCAB = len(ALPH)         # 51
    EMBED_DIM = 8
    HIDDEN_DIM = 32
    TAGSPACE = 8
    SENT_LEN = 6                   # S
    MAX_CHARS = 10                 # L (max chars per word, padded)

    key = jax.random.PRNGKey(0)
    k_params, k_data = jax.random.split(key)
    params = init_params(k_params, VOCAB_SIZE, CHAR_VOCAB,
                         EMBED_DIM, HIDDEN_DIM, TAGSPACE)

    k1, k2, k3 = jax.random.split(k_data, 3)
    sent_in = jax.random.randint(k1, (SENT_LEN,), 0, VOCAB_SIZE)
    word_lens = jax.random.randint(k2, (SENT_LEN,), 2, MAX_CHARS + 1).astype(jnp.int32)
    char_ids = jax.random.randint(k3, (SENT_LEN, MAX_CHARS), 0, CHAR_VOCAB)

    # Embedding lookups (gather) kept as plain-JAX glue; the hot path is in the kernel.
    emb_w = params['word_emb'][sent_in]            # (S, E)
    emb_ch = params['char_emb'][char_ids]          # (S, L, E); padding masked in-kernel

    log_probs = lstm_tagger_forward(emb_w, emb_ch, word_lens, params)
    jax.block_until_ready(log_probs)

    ref = reference_forward(emb_w, emb_ch, word_lens, params)
    assert log_probs.shape == (SENT_LEN, TAGSPACE)
    err = float(jnp.max(jnp.abs(log_probs - ref)))
    assert err < 1e-4, f"mismatch vs pure-JAX reference: {err}"
    print("KERNEL_OK")
</pallas_src>

<mosaic_0001>
module attributes {stable_mosaic.version = 11 : i64} {
  func.func @kernel(%arg0: i32, %arg1: memref<1xi32, #tpu.memory_space<smem>>, %arg2: memref<8x1xi32, #tpu.memory_space<vmem>>, %arg3: memref<8x8xf32, #tpu.memory_space<vmem>>, %arg4: memref<80x8xf32, #tpu.memory_space<vmem>>, %arg5: memref<8x128xf32, #tpu.memory_space<vmem>>, %arg6: memref<32x128xf32, #tpu.memory_space<vmem>>, %arg7: memref<1x128xf32, #tpu.memory_space<vmem>>, %arg8: memref<32x128xf32, #tpu.memory_space<vmem>>, %arg9: memref<1x128xf32, #tpu.memory_space<vmem>>, %arg10: memref<8x128xf32, #tpu.memory_space<vmem>>, %arg11: memref<32x128xf32, #tpu.memory_space<vmem>>, %arg12: memref<1x128xf32, #tpu.memory_space<vmem>>, %arg13: memref<32x128xf32, #tpu.memory_space<vmem>>, %arg14: memref<1x128xf32, #tpu.memory_space<vmem>>, %arg15: memref<8x128xf32, #tpu.memory_space<vmem>>, %arg16: memref<8x32xf32, #tpu.memory_space<vmem>>, %arg17: memref<80x128xf32, #tpu.memory_space<vmem>>, %arg18: memref<8x32xf32, #tpu.memory_space<vmem>>, %arg19: memref<8x32xf32, #tpu.memory_space<vmem>>, %arg20: memref<8x32xf32, #tpu.memory_space<vmem>>) attributes {dimension_semantics = [#tpu.dimension_semantics<arbitrary>], iteration_bounds = array<i64: 1>, scalar_prefetch = 1 : i64, scratch_operands = 5 : i64, tpu.core_type = #tpu.core_type<tc>, window_params = [{pipeline_mode = #tpu.pipeline_mode<synchronous>, transform_indices = @transform_0, window_bounds = array<i64: 8, 1>}, {pipeline_mode = #tpu.pipeline_mode<synchronous>, transform_indices = @transform_1, window_bounds = array<i64: 8, 8>}, {pipeline_mode = #tpu.pipeline_mode<synchronous>, transform_indices = @transform_2, window_bounds = array<i64: 80, 8>}, {pipeline_mode = #tpu.pipeline_mode<synchronous>, transform_indices = @transform_3, window_bounds = array<i64: 8, 128>}, {pipeline_mode = #tpu.pipeline_mode<synchronous>, transform_indices = @transform_4, window_bounds = array<i64: 32, 128>}, {pipeline_mode = #tpu.pipeline_mode<synchronous>, transform_indices = @transform_5, window_bounds = array<i64: 1, 128>}, {pipeline_mode = #tpu.pipeline_mode<synchronous>, transform_indices = @transform_6, window_bounds = array<i64: 32, 128>}, {pipeline_mode = #tpu.pipeline_mode<synchronous>, transform_indices = @transform_7, window_bounds = array<i64: 1, 128>}, {pipeline_mode = #tpu.pipeline_mode<synchronous>, transform_indices = @transform_8, window_bounds = array<i64: 8, 128>}, {pipeline_mode = #tpu.pipeline_mode<synchronous>, transform_indices = @transform_9, window_bounds = array<i64: 32, 128>}, {pipeline_mode = #tpu.pipeline_mode<synchronous>, transform_indices = @transform_10, window_bounds = array<i64: 1, 128>}, {pipeline_mode = #tpu.pipeline_mode<synchronous>, transform_indices = @transform_11, window_bounds = array<i64: 32, 128>}, {pipeline_mode = #tpu.pipeline_mode<synchronous>, transform_indices = @transform_12, window_bounds = array<i64: 1, 128>}, {pipeline_mode = #tpu.pipeline_mode<synchronous>, transform_indices = @transform_13, window_bounds = array<i64: 8, 128>}]} {
    %c0 = arith.constant 0 : index
    %c0_0 = arith.constant 0 : index
    %0 = vector.load %arg3[%c0, %c0_0] : memref<8x8xf32, #tpu.memory_space<vmem>>, vector<8x8xf32>
    %c0_1 = arith.constant 0 : index
    %c0_2 = arith.constant 0 : index
    %1 = vector.load %arg5[%c0_1, %c0_2] : memref<8x128xf32, #tpu.memory_space<vmem>>, vector<8x128xf32>
    %cst = arith.constant dense<0.000000e+00> : vector<8x128xf32>
    %2 = tpu.matmul %0, %1, %cst {dimension_numbers = #tpu.dot_dimension_numbers<[1], [0], [0], [1], [0, 0, 1, 1], [], []>} : vector<8x8xf32>, vector<8x128xf32>, vector<8x128xf32> -> vector<8x128xf32>
    %c0_3 = arith.constant 0 : index
    %c0_4 = arith.constant 0 : index
    %3 = vector.load %arg7[%c0_3, %c0_4] : memref<1x128xf32, #tpu.memory_space<vmem>>, vector<1x128xf32>
    %4 = vector.broadcast %3 : vector<1x128xf32> to vector<8x128xf32>
    %5 = arith.addf %2, %4 : vector<8x128xf32>
    %c0_5 = arith.constant 0 : index
    %c0_6 = arith.constant 0 : index
    %6 = vector.load %arg4[%c0_5, %c0_6] : memref<80x8xf32, #tpu.memory_space<vmem>>, vector<80x8xf32>
    %c0_7 = arith.constant 0 : index
    %c0_8 = arith.constant 0 : index
    %7 = vector.load %arg10[%c0_7, %c0_8] : memref<8x128xf32, #tpu.memory_space<vmem>>, vector<8x128xf32>
    %cst_9 = arith.constant dense<0.000000e+00> : vector<80x128xf32>
    %8 = tpu.matmul %6, %7, %cst_9 {dimension_numbers = #tpu.dot_dimension_numbers<[1], [0], [0], [1], [0, 0, 1, 1], [], []>} : vector<80x8xf32>, vector<8x128xf32>, vector<80x128xf32> -> vector<80x128xf32>
    %c0_10 = arith.constant 0 : index
    %c0_11 = arith.constant 0 : index
    %9 = vector.load %arg12[%c0_10, %c0_11] : memref<1x128xf32, #tpu.memory_space<vmem>>, vector<1x128xf32>
    %10 = vector.broadcast %9 : vector<1x128xf32> to vector<80x128xf32>
    %11 = arith.addf %8, %10 : vector<80x128xf32>
    %c0_12 = arith.constant 0 : index
    %c0_13 = arith.constant 0 : index
    %12 = vector.load %arg17[%c0_12, %c0_13] : memref<80x128xf32, #tpu.memory_space<vmem>>, vector<80x128xf32>
    tpu.vector_store %arg17[%c0_12, %c0_13], %11 {strides = array<i32>} : memref<80x128xf32, #tpu.memory_space<vmem>>, vector<80x128xf32>,
    %cst_14 = arith.constant 0.000000e+00 : f32
    %13 = vector.broadcast %cst_14 : f32 to vector<8x32xf32>
    %c0_15 = arith.constant 0 : index
    %c0_16 = arith.constant 0 : index
    %14 = vector.load %arg16[%c0_15, %c0_16] : memref<8x32xf32, #tpu.memory_space<vmem>>, vector<8x32xf32>
    tpu.vector_store %arg16[%c0_15, %c0_16], %13 {strides = array<i32>} : memref<8x32xf32, #tpu.memory_space<vmem>>, vector<8x32xf32>,
    %c0_17 = arith.constant 0 : index
    %c0_18 = arith.constant 0 : index
    %15 = vector.load %arg6[%c0_17, %c0_18] : memref<32x128xf32, #tpu.memory_space<vmem>>, vector<32x128xf32>
    %cst_19 = arith.constant 0.000000e+00 : f32
    %16 = vector.broadcast %cst_19 : f32 to vector<1x32xf32>
    %cst_20 = arith.constant 0.000000e+00 : f32
    %17 = vector.broadcast %cst_20 : f32 to vector<1x32xf32>
    %18 = vector.extract_strided_slice %5 {offsets = [0, 0], sizes = [1, 128], strides = [1, 1]} : vector<8x128xf32> to vector<1x128xf32>
    %cst_21 = arith.constant dense<0.000000e+00> : vector<1x128xf32>
    %19 = tpu.matmul %16, %15, %cst_21 {dimension_numbers = #tpu.dot_dimension_numbers<[1], [0], [0], [1], [0, 0, 1, 1], [], []>} : vector<1x32xf32>, vector<32x128xf32>, vector<1x128xf32> -> vector<1x128xf32>
    %20 = arith.addf %18, %19 : vector<1x128xf32>
    %21 = vector.extract_strided_slice %20 {offsets = [0, 0], sizes = [1, 32], strides = [1, 1]} : vector<1x128xf32> to vector<1x32xf32>
    %22 = arith.negf %21 : vector<1x32xf32>
    %23 = math.exp %22 : vector<1x32xf32>
    %cst_22 = arith.constant 1.000000e+00 : f32
    %24 = vector.broadcast %cst_22 : f32 to vector<1x32xf32>
    %25 = arith.addf %24, %23 : vector<1x32xf32>
    %26 = arith.divf %24, %25 : vector<1x32xf32>
    %27 = vector.extract_strided_slice %20 {offsets = [0, 32], sizes = [1, 32], strides = [1, 1]} : vector<1x128xf32> to vector<1x32xf32>
    %28 = arith.negf %27 : vector<1x32xf32>
    %29 = math.exp %28 : vector<1x32xf32>
    %cst_23 = arith.constant 1.000000e+00 : f32
    %30 = vector.broadcast %cst_23 : f32 to vector<1x32xf32>
    %31 = arith.addf %30, %29 : vector<1x32xf32>
    %32 = arith.divf %30, %31 : vector<1x32xf32>
    %33 = vector.extract_strided_slice %20 {offsets = [0, 64], sizes = [1, 32], strides = [1, 1]} : vector<1x128xf32> to vector<1x32xf32>
    %34 = math.tanh %33 : vector<1x32xf32>
    %35 = vector.extract_strided_slice %20 {offsets = [0, 96], sizes = [1, 32], strides = [1, 1]} : vector<1x128xf32> to vector<1x32xf32>
    %36 = arith.negf %35 : vector<1x32xf32>
    %37 = math.exp %36 : vector<1x32xf32>
    %cst_24 = arith.constant 1.000000e+00 : f32
    %38 = vector.broadcast %cst_24 : f32 to vector<1x32xf32>
    %39 = arith.addf %38, %37 : vector<1x32xf32>
    %40 = arith.divf %38, %39 : vector<1x32xf32>
    %41 = arith.mulf %32, %17 : vector<1x32xf32>
    %42 = arith.mulf %26, %34 : vector<1x32xf32>
    %43 = arith.addf %41, %42 : vector<1x32xf32>
    %44 = math.tanh %43 : vector<1x32xf32>
    %45 = arith.mulf %40, %44 : vector<1x32xf32>
    %c0_25 = arith.constant 0 : index
    %c0_26 = arith.constant 0 : index
    %46 = vector.load %arg16[%c0_25, %c0_26] : memref<8x32xf32, #tpu.memory_space<vmem>>, vector<1x32xf32>
    tpu.vector_store %arg16[%c0_25, %c0_26], %45 {strides = array<i32>} : memref<8x32xf32, #tpu.memory_space<vmem>>, vector<1x32xf32>,
    %47 = vector.extract_strided_slice %5 {offsets = [1, 0], sizes = [1, 128], strides = [1, 1]} : vector<8x128xf32> to vector<1x128xf32>
    %cst_27 = arith.constant dense<0.000000e+00> : vector<1x128xf32>
    %48 = tpu.matmul %45, %15, %cst_27 {dimension_numbers = #tpu.dot_dimension_numbers<[1], [0], [0], [1], [0, 0, 1, 1], [], []>} : vector<1x32xf32>, vector<32x128xf32>, vector<1x128xf32> -> vector<1x128xf32>
    %49 = arith.addf %47, %48 : vector<1x128xf32>
    %50 = vector.extract_strided_slice %49 {offsets = [0, 0], sizes = [1, 32], strides = [1, 1]} : vector<1x128xf32> to vector<1x32xf32>
    %51 = arith.negf %50 : vector<1x32xf32>
    %52 = math.exp %51 : vector<1x32xf32>
    %cst_28 = arith.constant 1.000000e+00 : f32
    %53 = vector.broadcast %cst_28 : f32 to vector<1x32xf32>
    %54 = arith.addf %53, %52 : vector<1x32xf32>
    %55 = arith.divf %53, %54 : vector<1x32xf32>
    %56 = vector.extract_strided_slice %49 {offsets = [0, 32], sizes = [1, 32], strides = [1, 1]} : vector<1x128xf32> to vector<1x32xf32>
    %57 = arith.negf %56 : vector<1x32xf32>
    %58 = math.exp %57 : vector<1x32xf32>
    %cst_29 = arith.constant 1.000000e+00 : f32
    %59 = vector.broadcast %cst_29 : f32 to vector<1x32xf32>
    %60 = arith.addf %59, %58 : vector<1x32xf32>
    %61 = arith.divf %59, %60 : vector<1x32xf32>
    %62 = vector.extract_strided_slice %49 {offsets = [0, 64], sizes = [1, 32], strides = [1, 1]} : vector<1x128xf32> to vector<1x32xf32>
    %63 = math.tanh %62 : vector<1x32xf32>
    %64 = vector.extract_strided_slice %49 {offsets = [0, 96], sizes = [1, 32], strides = [1, 1]} : vector<1x128xf32> to vector<1x32xf32>
    %65 = arith.negf %64 : vector<1x32xf32>
    %66 = math.exp %65 : vector<1x32xf32>
    %cst_30 = arith.constant 1.000000e+00 : f32
    %67 = vector.broadcast %cst_30 : f32 to vector<1x32xf32>
    %68 = arith.addf %67, %66 : vector<1x32xf32>
    %69 = arith.divf %67, %68 : vector<1x32xf32>
    %70 = arith.mulf %61, %43 : vector<1x32xf32>
    %71 = arith.mulf %55, %63 : vector<1x32xf32>
    %72 = arith.addf %70, %71 : vector<1x32xf32>
    %73 = math.tanh %72 : vector<1x32xf32>
    %74 = arith.mulf %69, %73 : vector<1x32xf32>
    %c1 = arith.constant 1 : index
    %c0_31 = arith.constant 0 : index
    %75 = vector.load %arg16[%c1, %c0_31] : memref<8x32xf32, #tpu.memory_space<vmem>>, vector<1x32xf32>
    tpu.vector_store %arg16[%c1, %c0_31], %74 {strides = array<i32>} : memref<8x32xf32, #tpu.memory_space<vmem>>, vector<1x32xf32>,
    %76 = vector.extract_strided_slice %5 {offsets = [2, 0], sizes = [1, 128], strides = [1, 1]} : vector<8x128xf32> to vector<1x128xf32>
    %cst_32 = arith.constant dense<0.000000e+00> : vector<1x128xf32>
    %77 = tpu.matmul %74, %15, %cst_32 {dimension_numbers = #tpu.dot_dimension_numbers<[1], [0], [0], [1], [0, 0, 1, 1], [], []>} : vector<1x32xf32>, vector<32x128xf32>, vector<1x128xf32> -> vector<1x128xf32>
    %78 = arith.addf %76, %77 : vector<1x128xf32>
    %79 = vector.extract_strided_slice %78 {offsets = [0, 0], sizes = [1, 32], strides = [1, 1]} : vector<1x128xf32> to vector<1x32xf32>
    %80 = arith.negf %79 : vector<1x32xf32>
    %81 = math.exp %80 : vector<1x32xf32>
    %cst_33 = arith.constant 1.000000e+00 : f32
    %82 = vector.broadcast %cst_33 : f32 to vector<1x32xf32>
    %83 = arith.addf %82, %81 : vector<1x32xf32>
    %84 = arith.divf %82, %83 : vector<1x32xf32>
    %85 = vector.extract_strided_slice %78 {offsets = [0, 32], sizes = [1, 32], strides = [1, 1]} : vector<1x128xf32> to vector<1x32xf32>
    %86 = arith.negf %85 : vector<1x32xf32>
    %87 = math.exp %86 : vector<1x32xf32>
    %cst_34 = arith.constant 1.000000e+00 : f32
    %88 = vector.broadcast %cst_34 : f32 to vector<1x32xf32>
    %89 = arith.addf %88, %87 : vector<1x32xf32>
    %90 = arith.divf %88, %89 : vector<1x32xf32>
    %91 = vector.extract_strided_slice %78 {offsets = [0, 64], sizes = [1, 32], strides = [1, 1]} : vector<1x128xf32> to vector<1x32xf32>
    %92 = math.tanh %91 : vector<1x32xf32>
    %93 = vector.extract_strided_slice %78 {offsets = [0, 96], sizes = [1, 32], strides = [1, 1]} : vector<1x128xf32> to vector<1x32xf32>
    %94 = arith.negf %93 : vector<1x32xf32>
    %95 = math.exp %94 : vector<1x32xf32>
    %cst_35 = arith.constant 1.000000e+00 : f32
    %96 = vector.broadcast %cst_35 : f32 to vector<1x32xf32>
    %97 = arith.addf %96, %95 : vector<1x32xf32>
    %98 = arith.divf %96, %97 : vector<1x32xf32>
    %99 = arith.mulf %90, %72 : vector<1x32xf32>
    %100 = arith.mulf %84, %92 : vector<1x32xf32>
    %101 = arith.addf %99, %100 : vector<1x32xf32>
    %102 = math.tanh %101 : vector<1x32xf32>
    %103 = arith.mulf %98, %102 : vector<1x32xf32>
    %c2 = arith.constant 2 : index
    %c0_36 = arith.constant 0 : index
    %104 = vector.load %arg16[%c2, %c0_36] : memref<8x32xf32, #tpu.memory_space<vmem>>, vector<1x32xf32>
    tpu.vector_store %arg16[%c2, %c0_36], %103 {strides = array<i32>} : memref<8x32xf32, #tpu.memory_space<vmem>>, vector<1x32xf32>,
    %105 = vector.extract_strided_slice %5 {offsets = [3, 0], sizes = [1, 128], strides = [1, 1]} : vector<8x128xf32> to vector<1x128xf32>
    %cst_37 = arith.constant dense<0.000000e+00> : vector<1x128xf32>
    %106 = tpu.matmul %103, %15, %cst_37 {dimension_numbers = #tpu.dot_dimension_numbers<[1], [0], [0], [1], [0, 0, 1, 1], [], []>} : vector<1x32xf32>, vector<32x128xf32>, vector<1x128xf32> -> vector<1x128xf32>
    %107 = arith.addf %105, %106 : vector<1x128xf32>
    %108 = vector.extract_strided_slice %107 {offsets = [0, 0], sizes = [1, 32], strides = [1, 1]} : vector<1x128xf32> to vector<1x32xf32>
    %109 = arith.negf %108 : vector<1x32xf32>
    %110 = math.exp %109 : vector<1x32xf32>
    %cst_38 = arith.constant 1.000000e+00 : f32
    %111 = vector.broadcast %cst_38 : f32 to vector<1x32xf32>
    %112 = arith.addf %111, %110 : vector<1x32xf32>
    %113 = arith.divf %111, %112 : vector<1x32xf32>
    %114 = vector.extract_strided_slice %107 {offsets = [0, 32], sizes = [1, 32], strides = [1, 1]} : vector<1x128xf32> to vector<1x32xf32>
    %115 = arith.negf %114 : vector<1x32xf32>
    %116 = math.exp %115 : vector<1x32xf32>
    %cst_39 = arith.constant 1.000000e+00 : f32
    %117 = vector.broadcast %cst_39 : f32 to vector<1x32xf32>
    %118 = arith.addf %117, %116 : vector<1x32xf32>
    %119 = arith.divf %117, %118 : vector<1x32xf32>
    %120 = vector.extract_strided_slice %107 {offsets = [0, 64], sizes = [1, 32], strides = [1, 1]} : vector<1x128xf32> to vector<1x32xf32>
    %121 = math.tanh %120 : vector<1x32xf32>
    %122 = vector.extract_strided_slice %107 {offsets = [0, 96], sizes = [1, 32], strides = [1, 1]} : vector<1x128xf32> to vector<1x32xf32>
    %123 = arith.negf %122 : vector<1x32xf32>
    %124 = math.exp %123 : vector<1x32xf32>
    %cst_40 = arith.constant 1.000000e+00 : f32
    %125 = vector.broadcast %cst_40 : f32 to vector<1x32xf32>
    %126 = arith.addf %125, %124 : vector<1x32xf32>
    %127 = arith.divf %125, %126 : vector<1x32xf32>
    %128 = arith.mulf %119, %101 : vector<1x32xf32>
    %129 = arith.mulf %113, %121 : vector<1x32xf32>
    %130 = arith.addf %128, %129 : vector<1x32xf32>
    %131 = math.tanh %130 : vector<1x32xf32>
    %132 = arith.mulf %127, %131 : vector<1x32xf32>
    %c3 = arith.constant 3 : index
    %c0_41 = arith.constant 0 : index
    %133 = vector.load %arg16[%c3, %c0_41] : memref<8x32xf32, #tpu.memory_space<vmem>>, vector<1x32xf32>
    tpu.vector_store %arg16[%c3, %c0_41], %132 {strides = array<i32>} : memref<8x32xf32, #tpu.memory_space<vmem>>, vector<1x32xf32>,
    %134 = vector.extract_strided_slice %5 {offsets = [4, 0], sizes = [1, 128], strides = [1, 1]} : vector<8x128xf32> to vector<1x128xf32>
    %cst_42 = arith.constant dense<0.000000e+00> : vector<1x128xf32>
    %135 = tpu.matmul %132, %15, %cst_42 {dimension_numbers = #tpu.dot_dimension_numbers<[1], [0], [0], [1], [0, 0, 1, 1], [], []>} : vector<1x32xf32>, vector<32x128xf32>, vector<1x128xf32> -> vector<1x128xf32>
    %136 = arith.addf %134, %135 : vector<1x128xf32>
    %137 = vector.extract_strided_slice %136 {offsets = [0, 0], sizes = [1, 32], strides = [1, 1]} : vector<1x128xf32> to vector<1x32xf32>
    %138 = arith.negf %137 : vector<1x32xf32>
    %139 = math.exp %138 : vector<1x32xf32>
    %cst_43 = arith.constant 1.000000e+00 : f32
    %140 = vector.broadcast %cst_43 : f32 to vector<1x32xf32>
    %141 = arith.addf %140, %139 : vector<1x32xf32>
    %142 = arith.divf %140, %141 : vector<1x32xf32>
    %143 = vector.extract_strided_slice %136 {offsets = [0, 32], sizes = [1, 32], strides = [1, 1]} : vector<1x128xf32> to vector<1x32xf32>
    %144 = arith.negf %143 : vector<1x32xf32>
    %145 = math.exp %144 : vector<1x32xf32>
    %cst_44 = arith.constant 1.000000e+00 : f32
    %146 = vector.broadcast %cst_44 : f32 to vector<1x32xf32>
    %147 = arith.addf %146, %145 : vector<1x32xf32>
    %148 = arith.divf %146, %147 : vector<1x32xf32>
    %149 = vector.extract_strided_slice %136 {offsets = [0, 64], sizes = [1, 32], strides = [1, 1]} : vector<1x128xf32> to vector<1x32xf32>
    %150 = math.tanh %149 : vector<1x32xf32>
    %151 = vector.extract_strided_slice %136 {offsets = [0, 96], sizes = [1, 32], strides = [1, 1]} : vector<1x128xf32> to vector<1x32xf32>
    %152 = arith.negf %151 : vector<1x32xf32>
    %153 = math.exp %152 : vector<1x32xf32>
    %cst_45 = arith.constant 1.000000e+00 : f32
    %154 = vector.broadcast %cst_45 : f32 to vector<1x32xf32>
    %155 = arith.addf %154, %153 : vector<1x32xf32>
    %156 = arith.divf %154, %155 : vector<1x32xf32>
    %157 = arith.mulf %148, %130 : vector<1x32xf32>
    %158 = arith.mulf %142, %150 : vector<1x32xf32>
    %159 = arith.addf %157, %158 : vector<1x32xf32>
    %160 = math.tanh %159 : vector<1x32xf32>
    %161 = arith.mulf %156, %160 : vector<1x32xf32>
    %c4 = arith.constant 4 : index
    %c0_46 = arith.constant 0 : index
    %162 = vector.load %arg16[%c4, %c0_46] : memref<8x32xf32, #tpu.memory_space<vmem>>, vector<1x32xf32>
    tpu.vector_store %arg16[%c4, %c0_46], %161 {strides = array<i32>} : memref<8x32xf32, #tpu.memory_space<vmem>>, vector<1x32xf32>,
    %163 = vector.extract_strided_slice %5 {offsets = [5, 0], sizes = [1, 128], strides = [1, 1]} : vector<8x128xf32> to vector<1x128xf32>
    %cst_47 = arith.constant dense<0.000000e+00> : vector<1x128xf32>
    %164 = tpu.matmul %161, %15, %cst_47 {dimension_numbers = #tpu.dot_dimension_numbers<[1], [0], [0], [1], [0, 0, 1, 1], [], []>} : vector<1x32xf32>, vector<32x128xf32>, vector<1x128xf32> -> vector<1x128xf32>
    %165 = arith.addf %163, %164 : vector<1x128xf32>
    %166 = vector.extract_strided_slice %165 {offsets = [0, 0], sizes = [1, 32], strides = [1, 1]} : vector<1x128xf32> to vector<1x32xf32>
    %167 = arith.negf %166 : vector<1x32xf32>
    %168 = math.exp %167 : vector<1x32xf32>
    %cst_48 = arith.constant 1.000000e+00 : f32
    %169 = vector.broadcast %cst_48 : f32 to vector<1x32xf32>
    %170 = arith.addf %169, %168 : vector<1x32xf32>
    %171 = arith.divf %169, %170 : vector<1x32xf32>
    %172 = vector.extract_strided_slice %165 {offsets = [0, 32], sizes = [1, 32], strides = [1, 1]} : vector<1x128xf32> to vector<1x32xf32>
    %173 = arith.negf %172 : vector<1x32xf32>
    %174 = math.exp %173 : vector<1x32xf32>
    %cst_49 = arith.constant 1.000000e+00 : f32
    %175 = vector.broadcast %cst_49 : f32 to vector<1x32xf32>
    %176 = arith.addf %175, %174 : vector<1x32xf32>
    %177 = arith.divf %175, %176 : vector<1x32xf32>
    %178 = vector.extract_strided_slice %165 {offsets = [0, 64], sizes = [1, 32], strides = [1, 1]} : vector<1x128xf32> to vector<1x32xf32>
    %179 = math.tanh %178 : vector<1x32xf32>
    %180 = vector.extract_strided_slice %165 {offsets = [0, 96], sizes = [1, 32], strides = [1, 1]} : vector<1x128xf32> to vector<1x32xf32>
    %181 = arith.negf %180 : vector<1x32xf32>
    %182 = math.exp %181 : vector<1x32xf32>
    %cst_50 = arith.constant 1.000000e+00 : f32
    %183 = vector.broadcast %cst_50 : f32 to vector<1x32xf32>
    %184 = arith.addf %183, %182 : vector<1x32xf32>
    %185 = arith.divf %183, %184 : vector<1x32xf32>
    %186 = arith.mulf %177, %159 : vector<1x32xf32>
    %187 = arith.mulf %171, %179 : vector<1x32xf32>
    %188 = arith.addf %186, %187 : vector<1x32xf32>
    %189 = math.tanh %188 : vector<1x32xf32>
    %190 = arith.mulf %185, %189 : vector<1x32xf32>
    %c5 = arith.constant 5 : index
    %c0_51 = arith.constant 0 : index
    %191 = vector.load %arg16[%c5, %c0_51] : memref<8x32xf32, #tpu.memory_space<vmem>>, vector<1x32xf32>
    tpu.vector_store %arg16[%c5, %c0_51], %190 {strides = array<i32>} : memref<8x32xf32, #tpu.memory_space<vmem>>, vector<1x32xf32>,
    %c0_52 = arith.constant 0 : index
    %c0_53 = arith.constant 0 : index
    %192 = vector.load %arg16[%c0_52, %c0_53] : memref<8x32xf32, #tpu.memory_space<vmem>>, vector<8x32xf32>
    %c0_54 = arith.constant 0 : index
    %c0_55 = arith.constant 0 : index
    %193 = vector.load %arg8[%c0_54, %c0_55] : memref<32x128xf32, #tpu.memory_space<vmem>>, vector<32x128xf32>
    %cst_56 = arith.constant dense<0.000000e+00> : vector<8x128xf32>
    %194 = tpu.matmul %192, %193, %cst_56 {dimension_numbers = #tpu.dot_dimension_numbers<[1], [0], [0], [1], [0, 0, 1, 1], [], []>} : vector<8x32xf32>, vector<32x128xf32>, vector<8x128xf32> -> vector<8x128xf32>
    %c0_57 = arith.constant 0 : index
    %c0_58 = arith.constant 0 : index
    %195 = vector.load %arg9[%c0_57, %c0_58] : memref<1x128xf32, #tpu.memory_space<vmem>>, vector<1x128xf32>
    %196 = vector.broadcast %195 : vector<1x128xf32> to vector<8x128xf32>
    %197 = arith.addf %194, %196 : vector<8x128xf32>
    %cst_59 = arith.constant 0.000000e+00 : f32
    %198 = vector.broadcast %cst_59 : f32 to vector<8x32xf32>
    %c0_60 = arith.constant 0 : index
    %c0_61 = arith.constant 0 : index
    %199 = vector.load %arg18[%c0_60, %c0_61] : memref<8x32xf32, #tpu.memory_space<vmem>>, vector<8x32xf32>
    tpu.vector_store %arg18[%c0_60, %c0_61], %198 {strides = array<i32>} : memref<8x32xf32, #tpu.memory_space<vmem>>, vector<8x32xf32>,
    %cst_62 = arith.constant 0.000000e+00 : f32
    %200 = vector.broadcast %cst_62 : f32 to vector<8x32xf32>
    %c0_63 = arith.constant 0 : index
    %c0_64 = arith.constant 0 : index
    %201 = vector.load %arg19[%c0_63, %c0_64] : memref<8x32xf32, #tpu.memory_space<vmem>>, vector<8x32xf32>
    tpu.vector_store %arg19[%c0_63, %c0_64], %200 {strides = array<i32>} : memref<8x32xf32, #tpu.memory_space<vmem>>, vector<8x32xf32>,
    %cst_65 = arith.constant 0.000000e+00 : f32
    %202 = vector.broadcast %cst_65 : f32 to vector<8x32xf32>
    %c0_66 = arith.constant 0 : index
    %c0_67 = arith.constant 0 : index
    %203 = vector.load %arg20[%c0_66, %c0_67] : memref<8x32xf32, #tpu.memory_space<vmem>>, vector<8x32xf32>
    tpu.vector_store %arg20[%c0_66, %c0_67], %202 {strides = array<i32>} : memref<8x32xf32, #tpu.memory_space<vmem>>, vector<8x32xf32>,
    %c0_68 = arith.constant 0 : index
    %c0_69 = arith.constant 0 : index
    %204 = vector.load %arg11[%c0_68, %c0_69] : memref<32x128xf32, #tpu.memory_space<vmem>>, vector<32x128xf32>
    %c0_70 = arith.constant 0 : index
    %c0_71 = arith.constant 0 : index
    %205 = vector.load %arg2[%c0_70, %c0_71] : memref<8x1xi32, #tpu.memory_space<vmem>>, vector<8x1xi32>
    %c0_72 = arith.constant 0 : index
    %206 = memref.load %arg1[%c0_72] : memref<1xi32, #tpu.memory_space<smem>>
    %c0_i32 = arith.constant 0 : i32
    %c0_i32_73 = arith.constant 0 : i32
    %207 = arith.subi %206, %c0_i32_73 : i32
    %208 = arith.addi %c0_i32_73, %207 : i32
    %c1_i32 = arith.constant 1 : i32
    scf.for %arg21 = %c0_i32_73 to %208 step %c1_i32  : i32 {
      %c8_i32 = arith.constant 8 : i32
      %228 = arith.muli %arg21, %c8_i32 : i32
      %229 = tpu.assume_multiple %228, 8 : i32
      %230 = arith.index_cast %229 : i32 to index
      %c0_85 = arith.constant 0 : index
      %231 = vector.load %arg17[%230, %c0_85] : memref<80x128xf32, #tpu.memory_space<vmem>>, vector<8x128xf32>
      %c0_86 = arith.constant 0 : index
      %c0_87 = arith.constant 0 : index
      %232 = vector.load %arg18[%c0_86, %c0_87] : memref<8x32xf32, #tpu.memory_space<vmem>>, vector<8x32xf32>
      %c0_88 = arith.constant 0 : index
      %c0_89 = arith.constant 0 : index
      %233 = vector.load %arg19[%c0_88, %c0_89] : memref<8x32xf32, #tpu.memory_space<vmem>>, vector<8x32xf32>
      %cst_90 = arith.constant dense<0.000000e+00> : vector<8x128xf32>
      %234 = tpu.matmul %232, %204, %cst_90 {dimension_numbers = #tpu.dot_dimension_numbers<[1], [0], [0], [1], [0, 0, 1, 1], [], []>} : vector<8x32xf32>, vector<32x128xf32>, vector<8x128xf32> -> vector<8x128xf32>
      %235 = arith.addf %231, %234 : vector<8x128xf32>
      %236 = vector.extract_strided_slice %235 {offsets = [0, 0], sizes = [8, 32], strides = [1, 1]} : vector<8x128xf32> to vector<8x32xf32>
      %237 = arith.negf %236 : vector<8x32xf32>
      %238 = math.exp %237 : vector<8x32xf32>
      %cst_91 = arith.constant 1.000000e+00 : f32
      %239 = vector.broadcast %cst_91 : f32 to vector<8x32xf32>
      %240 = arith.addf %239, %238 : vector<8x32xf32>
      %241 = arith.divf %239, %240 : vector<8x32xf32>
      %242 = vector.extract_strided_slice %235 {offsets = [0, 32], sizes = [8, 32], strides = [1, 1]} : vector<8x128xf32> to vector<8x32xf32>
      %243 = arith.negf %242 : vector<8x32xf32>
      %244 = math.exp %243 : vector<8x32xf32>
      %cst_92 = arith.constant 1.000000e+00 : f32
      %245 = vector.broadcast %cst_92 : f32 to vector<8x32xf32>
      %246 = arith.addf %245, %244 : vector<8x32xf32>
      %247 = arith.divf %245, %246 : vector<8x32xf32>
      %248 = vector.extract_strided_slice %235 {offsets = [0, 64], sizes = [8, 32], strides = [1, 1]} : vector<8x128xf32> to vector<8x32xf32>
      %249 = math.tanh %248 : vector<8x32xf32>
      %250 = vector.extract_strided_slice %235 {offsets = [0, 96], sizes = [8, 32], strides = [1, 1]} : vector<8x128xf32> to vector<8x32xf32>
      %251 = arith.negf %250 : vector<8x32xf32>
      %252 = math.exp %251 : vector<8x32xf32>
      %cst_93 = arith.constant 1.000000e+00 : f32
      %253 = vector.broadcast %cst_93 : f32 to vector<8x32xf32>
      %254 = arith.addf %253, %252 : vector<8x32xf32>
      %255 = arith.divf %253, %254 : vector<8x32xf32>
      %256 = arith.mulf %247, %233 : vector<8x32xf32>
      %257 = arith.mulf %241, %249 : vector<8x32xf32>
      %258 = arith.addf %256, %257 : vector<8x32xf32>
      %259 = math.tanh %258 : vector<8x32xf32>
      %260 = arith.mulf %255, %259 : vector<8x32xf32>
      %261 = vector.broadcast %arg21 : i32 to vector<8x1xi32>
      %262 = arith.cmpi slt, %261, %205 : vector<8x1xi32>
      %c0_94 = arith.constant 0 : index
      %c0_95 = arith.constant 0 : index
      %263 = vector.load %arg18[%c0_94, %c0_95] : memref<8x32xf32, #tpu.memory_space<vmem>>, vector<8x32xf32>
      %264 = vector.shape_cast %262 : vector<8x1xi1> to vector<8x1xi1>
      %265 = vector.broadcast %264 : vector<8x1xi1> to vector<8x32xi1>
      %266 = arith.select %265, %260, %263 : vector<8x32xi1>, vector<8x32xf32>
      %c0_96 = arith.constant 0 : index
      %c0_97 = arith.constant 0 : index
      %267 = vector.load %arg18[%c0_96, %c0_97] : memref<8x32xf32, #tpu.memory_space<vmem>>, vector<8x32xf32>
      tpu.vector_store %arg18[%c0_96, %c0_97], %266 {strides = array<i32>} : memref<8x32xf32, #tpu.memory_space<vmem>>, vector<8x32xf32>,
      %c0_98 = arith.constant 0 : index
      %c0_99 = arith.constant 0 : index
      %268 = vector.load %arg19[%c0_98, %c0_99] : memref<8x32xf32, #tpu.memory_space<vmem>>, vector<8x32xf32>
      %269 = vector.shape_cast %262 : vector<8x1xi1> to vector<8x1xi1>
      %270 = vector.broadcast %269 : vector<8x1xi1> to vector<8x32xi1>
      %271 = arith.select %270, %258, %268 : vector<8x32xi1>, vector<8x32xf32>
      %c0_100 = arith.constant 0 : index
      %c0_101 = arith.constant 0 : index
      %272 = vector.load %arg19[%c0_100, %c0_101] : memref<8x32xf32, #tpu.memory_space<vmem>>, vector<8x32xf32>
      tpu.vector_store %arg19[%c0_100, %c0_101], %271 {strides = array<i32>} : memref<8x32xf32, #tpu.memory_space<vmem>>, vector<8x32xf32>,
      %c0_102 = arith.constant 0 : index
      %c0_103 = arith.constant 0 : index
      %273 = vector.load %arg20[%c0_102, %c0_103] : memref<8x32xf32, #tpu.memory_space<vmem>>, vector<8x32xf32>
      %cst_104 = arith.constant 0.000000e+00 : f32
      %274 = vector.shape_cast %262 : vector<8x1xi1> to vector<8x1xi1>
      %275 = vector.broadcast %274 : vector<8x1xi1> to vector<8x32xi1>
      %276 = vector.broadcast %cst_104 : f32 to vector<8x32xf32>
      %277 = arith.select %275, %260, %276 : vector<8x32xi1>, vector<8x32xf32>
      %278 = arith.addf %273, %277 : vector<8x32xf32>
      %c0_105 = arith.constant 0 : index
      %c0_106 = arith.constant 0 : index
      %279 = vector.load %arg20[%c0_105, %c0_106] : memref<8x32xf32, #tpu.memory_space<vmem>>, vector<8x32xf32>
      tpu.vector_store %arg20[%c0_105, %c0_106], %278 {strides = array<i32>} : memref<8x32xf32, #tpu.memory_space<vmem>>, vector<8x32xf32>,
    }
    %c0_74 = arith.constant 0 : index
    %c0_75 = arith.constant 0 : index
    %209 = vector.load %arg20[%c0_74, %c0_75] : memref<8x32xf32, #tpu.memory_space<vmem>>, vector<8x32xf32>
    %c0_76 = arith.constant 0 : index
    %c0_77 = arith.constant 0 : index
    %210 = vector.load %arg13[%c0_76, %c0_77] : memref<32x128xf32, #tpu.memory_space<vmem>>, vector<32x128xf32>
    %cst_78 = arith.constant dense<0.000000e+00> : vector<8x128xf32>
    %211 = tpu.matmul %209, %210, %cst_78 {dimension_numbers = #tpu.dot_dimension_numbers<[1], [0], [0], [1], [0, 0, 1, 1], [], []>} : vector<8x32xf32>, vector<32x128xf32>, vector<8x128xf32> -> vector<8x128xf32>
    %c0_79 = arith.constant 0 : index
    %c0_80 = arith.constant 0 : index
    %212 = vector.load %arg14[%c0_79, %c0_80] : memref<1x128xf32, #tpu.memory_space<vmem>>, vector<1x128xf32>
    %213 = vector.broadcast %212 : vector<1x128xf32> to vector<8x128xf32>
    %214 = arith.addf %211, %213 : vector<8x128xf32>
    %215 = arith.addf %197, %214 : vector<8x128xf32>
    %cst_81 = arith.constant dense<0xFF800000> : vector<8xf32>
    %216 = vector.multi_reduction <maximumf>, %215, %cst_81 [1] : vector<8x128xf32> to vector<8xf32>
    %217 = vector.shape_cast %216 : vector<8xf32> to vector<8x1xf32>
    %218 = vector.broadcast %217 : vector<8x1xf32> to vector<8x128xf32>
    %219 = arith.subf %215, %218 : vector<8x128xf32>
    %220 = math.exp %219 : vector<8x128xf32>
    %cst_82 = arith.constant dense<0.000000e+00> : vector<8xf32>
    %221 = vector.multi_reduction <add>, %220, %cst_82 [1] : vector<8x128xf32> to vector<8xf32>
    %222 = vector.shape_cast %221 : vector<8xf32> to vector<8x1xf32>
    %223 = math.log %222 : vector<8x1xf32>
    %224 = arith.addf %217, %223 : vector<8x1xf32>
    %225 = vector.broadcast %224 : vector<8x1xf32> to vector<8x128xf32>
    %226 = arith.subf %215, %225 : vector<8x128xf32>
    %c0_83 = arith.constant 0 : index
    %c0_84 = arith.constant 0 : index
    %227 = vector.load %arg15[%c0_83, %c0_84] : memref<8x128xf32, #tpu.memory_space<vmem>>, vector<8x128xf32>
    tpu.vector_store %arg15[%c0_83, %c0_84], %226 {strides = array<i32>} : memref<8x128xf32, #tpu.memory_space<vmem>>, vector<8x128xf32>,
    return
  }
  func.func @transform_0(%arg0: i32, %arg1: memref<1xi32, #tpu.memory_space<smem>>) -> (i32, i32) {
    %c0_i32 = arith.constant 0 : i32
    %c0_i32_0 = arith.constant 0 : i32
    %c0_i32_1 = arith.constant 0 : i32
    return %c0_i32, %c0_i32_0 : i32, i32
  }
  func.func @transform_1(%arg0: i32, %arg1: memref<1xi32, #tpu.memory_space<smem>>) -> (i32, i32) {
    %c0_i32 = arith.constant 0 : i32
    %c0_i32_0 = arith.constant 0 : i32
    %c0_i32_1 = arith.constant 0 : i32
    return %c0_i32, %c0_i32_0 : i32, i32
  }
  func.func @transform_2(%arg0: i32, %arg1: memref<1xi32, #tpu.memory_space<smem>>) -> (i32, i32) {
    %c0_i32 = arith.constant 0 : i32
    %c0_i32_0 = arith.constant 0 : i32
    %c0_i32_1 = arith.constant 0 : i32
    return %c0_i32, %c0_i32_0 : i32, i32
  }
  func.func @transform_3(%arg0: i32, %arg1: memref<1xi32, #tpu.memory_space<smem>>) -> (i32, i32) {
    %c0_i32 = arith.constant 0 : i32
    %c0_i32_0 = arith.constant 0 : i32
    %c0_i32_1 = arith.constant 0 : i32
    return %c0_i32, %c0_i32_0 : i32, i32
  }
  func.func @transform_4(%arg0: i32, %arg1: memref<1xi32, #tpu.memory_space<smem>>) -> (i32, i32) {
    %c0_i32 = arith.constant 0 : i32
    %c0_i32_0 = arith.constant 0 : i32
    %c0_i32_1 = arith.constant 0 : i32
    return %c0_i32, %c0_i32_0 : i32, i32
  }
  func.func @transform_5(%arg0: i32, %arg1: memref<1xi32, #tpu.memory_space<smem>>) -> (i32, i32) {
    %c0_i32 = arith.constant 0 : i32
    %c0_i32_0 = arith.constant 0 : i32
    %c0_i32_1 = arith.constant 0 : i32
    return %c0_i32, %c0_i32_0 : i32, i32
  }
  func.func @transform_6(%arg0: i32, %arg1: memref<1xi32, #tpu.memory_space<smem>>) -> (i32, i32) {
    %c0_i32 = arith.constant 0 : i32
    %c0_i32_0 = arith.constant 0 : i32
    %c0_i32_1 = arith.constant 0 : i32
    return %c0_i32, %c0_i32_0 : i32, i32
  }
  func.func @transform_7(%arg0: i32, %arg1: memref<1xi32, #tpu.memory_space<smem>>) -> (i32, i32) {
    %c0_i32 = arith.constant 0 : i32
    %c0_i32_0 = arith.constant 0 : i32
    %c0_i32_1 = arith.constant 0 : i32
    return %c0_i32, %c0_i32_0 : i32, i32
  }
  func.func @transform_8(%arg0: i32, %arg1: memref<1xi32, #tpu.memory_space<smem>>) -> (i32, i32) {
    %c0_i32 = arith.constant 0 : i32
    %c0_i32_0 = arith.constant 0 : i32
    %c0_i32_1 = arith.constant 0 : i32
    return %c0_i32, %c0_i32_0 : i32, i32
  }
  func.func @transform_9(%arg0: i32, %arg1: memref<1xi32, #tpu.memory_space<smem>>) -> (i32, i32) {
    %c0_i32 = arith.constant 0 : i32
    %c0_i32_0 = arith.constant 0 : i32
    %c0_i32_1 = arith.constant 0 : i32
    return %c0_i32, %c0_i32_0 : i32, i32
  }
  func.func @transform_10(%arg0: i32, %arg1: memref<1xi32, #tpu.memory_space<smem>>) -> (i32, i32) {
    %c0_i32 = arith.constant 0 : i32
    %c0_i32_0 = arith.constant 0 : i32
    %c0_i32_1 = arith.constant 0 : i32
    return %c0_i32, %c0_i32_0 : i32, i32
  }
  func.func @transform_11(%arg0: i32, %arg1: memref<1xi32, #tpu.memory_space<smem>>) -> (i32, i32) {
    %c0_i32 = arith.constant 0 : i32
    %c0_i32_0 = arith.constant 0 : i32
    %c0_i32_1 = arith.constant 0 : i32
    return %c0_i32, %c0_i32_0 : i32, i32
  }
  func.func @transform_12(%arg0: i32, %arg1: memref<1xi32, #tpu.memory_space<smem>>) -> (i32, i32) {
    %c0_i32 = arith.constant 0 : i32
    %c0_i32_0 = arith.constant 0 : i32
    %c0_i32_1 = arith.constant 0 : i32
    return %c0_i32, %c0_i32_0 : i32, i32
  }
  func.func @transform_13(%arg0: i32, %arg1: memref<1xi32, #tpu.memory_space<smem>>) -> (i32, i32) {
    %c0_i32 = arith.constant 0 : i32
    %c0_i32_0 = arith.constant 0 : i32
    %c0_i32_1 = arith.constant 0 : i32
    return %c0_i32, %c0_i32_0 : i32, i32
  }
}

</mosaic_0001>

<bundles_post_ra>
// kernel: tpu_custom_call.1
= control target key start
LH: loop header
LB: loop body
LE: loop exit
PB: predicated region body
PF: predicated region fallthrough
CT: control target
= control target key end

     0   :  { %20 = vsyncpa [#allocation10], 0  ;;  %s2222_s0 = inlined_call_operand.<no memory space> [shape: s32[1], index: 0, kind: input, shape index: {}]   ;;  %s2223_s1 = inlined_call_operand.vmem [shape: s32[8,1], index: 1, kind: input, shape index: {}]   ;;  %s2224_s2 = inlined_call_operand.hbm [shape: f32[8,8], index: 2, kind: input, shape index: {}]   ;;  %s2225_s3 = inlined_call_operand.vmem [shape: f32[80,8], index: 3, kind: input, shape index: {}]   ;;  %s2226_s4 = inlined_call_operand.hbm [shape: f32[8,128], index: 4, kind: input, shape index: {}]   ;;  %s2227_s5 = inlined_call_operand.vmem [shape: f32[32,128], index: 5, kind: input, shape index: {}]   ;;  %s2228_s6 = inlined_call_operand.vmem [shape: f32[1,128], index: 6, kind: input, shape index: {}]   ;;  %s2229_s7 = inlined_call_operand.vmem [shape: f32[32,128], index: 7, kind: input, shape index: {}]   ;;  %s2230_s8 = inlined_call_operand.vmem [shape: f32[1,128], index: 8, kind: input, shape index: {}]   ;;  %s2231_s9 = inlined_call_operand.hbm [shape: f32[8,128], index: 9, kind: input, shape index: {}]   ;;  %s2232_s10 = inlined_call_operand.vmem [shape: f32[32,128], index: 10, kind: input, shape index: {}]   ;;  %s2233_s11 = inlined_call_operand.vmem [shape: f32[1,128], index: 11, kind: input, shape index: {}]   ;;  %s2234_s12 = inlined_call_operand.vmem [shape: f32[32,128], index: 12, kind: input, shape index: {}]   ;;  %s2235_s13 = inlined_call_operand.vmem [shape: f32[1,128], index: 13, kind: input, shape index: {}]   ;;  %s2236_s14 = inlined_call_operand.hbm [shape: f32[8,128], index: 14, kind: output, shape index: {}]  }
   0x1   :  { %21 = vsyncpa [#allocation13], 0 }
   0x2   :  { %22 = vsyncpa [#allocation11], 0  ;;  %s1821_s29 = smov [#allocation12]   ;;  %s1822_s15 = smov [#allocation9]  }
   0x3   :  { %s43_s30 = sshll.u32 %s1821_s29, 4  ;;  %s31_s16 = sshll.u32 %s1822_s15, 4  ;;  %s44_s30 = int_to_ptr.vmem [resolvable:$true] %s43_s30  ;;  %s32_s16 = int_to_ptr.vmem [resolvable:$true] %s31_s16 }
   0x4   :  { %s1719_s19 = scalar_lea.hbm %s2226_s4, 128 }
   0x5   :  { %p1720_p0 = scmp.ne.s32.totalorder %s2226_s4, %s1719_s19  ;;  %p1723_p1 = scmp.lt.u32.totalorder %s1719_s19, %s2226_s4 }
   0x7   :  { %p1725_p2 = pnand %p1723_p1, %p1720_p0 }
   0x9   :  { %1728 = shalt.err (!%p1725_p2)
}
   0xa   :  { %s1729_s24 = scalar_lea.vmem %s44_s30, 128  ;;  %p1734_p4 = scmp.lt.s32.totalorder %s44_s30, %s44_s30 }
   0xb   :  { %p1730_p3 = scmp.ne.s32.totalorder %s44_s30, %s1729_s24  ;;  %p1735_p5 = scmp.lt.s32.totalorder %s1729_s24, %s1729_s24 }
   0xd   :  { %p1736_p6 = por %p1735_p5, %p1734_p4 }
   0xf   :  { %p1737_p7 = pnand %p1736_p6, %p1730_p3 }
  0x11   :  { %1740 = shalt.err (!%p1737_p7)
}
  0x12   :  { %46 = dma.hbm_to_vmem [thread:$0]  %s2226_s4, 128, %s44_s30, [#allocation13]  }
  0x13   :  { %s1741_s29 = scalar_lea.hbm %s2224_s2, 128 }
  0x14   :  { %p1742_p8 = scmp.ne.s32.totalorder %s2224_s2, %s1741_s29  ;;  %p1745_p9 = scmp.lt.u32.totalorder %s1741_s29, %s2224_s2 }
  0x16   :  { %p1747_p10 = pnand %p1745_p9, %p1742_p8 }
  0x18   :  { %1750 = shalt.err (!%p1747_p10)
}
  0x19   :  { %s1751_s20 = scalar_lea.vmem %s32_s16, 128  ;;  %p1756_p12 = scmp.lt.s32.totalorder %s32_s16, %s32_s16 }
  0x1a   :  { %p1752_p11 = scmp.ne.s32.totalorder %s32_s16, %s1751_s20  ;;  %p1757_p13 = scmp.lt.s32.totalorder %s1751_s20, %s1751_s20 }
  0x1c   :  { %p1758_p0 = por %p1757_p13, %p1756_p12 }
  0x1e   :  { %p1759_p1 = pnand %p1758_p0, %p1752_p11 }
  0x20   :  { %1762 = shalt.err (!%p1759_p1)
}
  0x21   :  { %34 = dma.hbm_to_vmem [thread:$0]  %s2224_s2, 128, %s32_s16, [#allocation10]  }
  0x22   :  { %s1823_s21 = smov [#allocation14]   ;;  %s1763_s25 = scalar_lea.hbm %s2231_s9, 128 }
  0x23   :  { %s61_s22 = sshll.u32 %s1823_s21, 4  ;;  %p1764_p2 = scmp.ne.s32.totalorder %s2231_s9, %s1763_s25  ;;  %s62_s22 = int_to_ptr.vmem [resolvable:$true] %s61_s22 }
  0x24   :  { %p1767_p3 = scmp.lt.u32.totalorder %s1763_s25, %s2231_s9 }
  0x26   :  { %p1769_p4 = pnand %p1767_p3, %p1764_p2 }
  0x28   :  { %1772 = shalt.err (!%p1769_p4)
}
  0x29   :  { %s1773_s15 = scalar_lea.vmem %s62_s22, 128  ;;  %p1778_p6 = scmp.lt.s32.totalorder %s62_s22, %s62_s22 }
  0x2a   :  { %p1774_p5 = scmp.ne.s32.totalorder %s62_s22, %s1773_s15  ;;  %p1779_p7 = scmp.lt.s32.totalorder %s1773_s15, %s1773_s15 }
  0x2c   :  { %p1780_p8 = por %p1779_p7, %p1778_p6 }
  0x2e   :  { %p1781_p9 = pnand %p1780_p8, %p1774_p5 }
  0x30   :  { %1784 = shalt.err (!%p1781_p9)
}
  0x31   :  { %64 = dma.hbm_to_vmem [thread:$0]  %s2231_s9, 128, %s62_s22, [#allocation13]  }
  0x32   :  { %1811 = dma.done.wait [#allocation10], 128  }
  0x33   :  { %1812 = vsyncadd [#allocation10], 4294967168 }
  0x34   :  { %1813 = dma.done.wait [#allocation13], 256  }
  0x35   :  { %1814 = vsyncadd [#allocation13], 4294967040  ;;  %v1824_v0 = vmov 0.0   ;;  %vm1825_vm0 = vmmov 0   ;;  %v1954_v1 = vld [vmem:[%s2232_s10] sm:$0xff]  ;;  %v1959_v2 = vld [vmem:[%s2232_s10 + $0x8] sm:$0xff] }
  0x36   :  { %1458 = vmatprep.subr.mxu0 %v1824_v0  ;;  %1460 = vmatprep.mubr.msk.f32.mxu0 %vm1825_vm0, %v1824_v0  ;;  %v1964_v3 = vld [vmem:[%s2232_s10 + $0x10] sm:$0xff]  ;;  %vm91_vm1 = vcmask 64512   ;;  %v1969_v4 = vld [vmem:[%s2232_s10 + $0x18] sm:$0xff]  ;;  %v1974_v5 = vld [vmem:[%s2223_s1] sm:$0xff]  ;;  %v1826_v10 = vmov 0.0|0.0   ;;  %s1827_s2 = smov 64  }
  0x37   :  { %v83_v6 = vld [vmem:[#allocation12] sm:$0xff]  ;;  %v82_v7 = vld [vmem:[#allocation9] sm:$0xff]  ;;  %v340_v8 = vld [vmem:[%s2227_s5] sm:$0xff]  ;;  %vm338_vm2 = vcmask 261120   ;;  %vm446_vm3 = vcmask 253952   ;;  %vm555_vm4 = vcmask 254977  }
  0x38   :  { %1459 = vmatpush3.msra.mxu0 %v83_v6  ;;  %v341_v9 = vld [vmem:[%s2227_s5 + $0x8] sm:$0xff]  ;;  %v342_v12 = vld [vmem:[%s2227_s5 + $0x10] sm:$0xff]  ;;  %v343_v13 = vld [vmem:[%s2227_s5 + $0x18] sm:$0xff]  ;;  %339 = vst.msk [vmem:[#allocation2] sm:$0xff] %vm338_vm2, %v1824_v0  ;;  %vm779_vm5 = vcmask 257027   ;;  %vm667_vm6 = vcmask 256002  }
  0x39   :  { %1461 = vmatmul.mubr.msk.f32.vlgmr.msra.gmra.mrb[0].mxu0 %vm91_vm1, %v82_v7  ;;  %1579 = vmatprep.subr.bf16.mxu0 %v1826_v10  ;;  %v1984_v11 = vpack.c.bf16 %v341_v9, %v340_v8  ;;  %v1995_v14 = vpack.c.bf16 %v343_v13, %v342_v12  ;;  %v1368_v17 = vld [vmem:[%s2228_s6] ss:$0 sm:$0xff]  ;;  %s1828_s6 = smov 32   ;;  %1090 = vst.msk [vmem:[#allocation4] sm:$0xff] %vm338_vm2, %v1824_v0  ;;  %1091 = vst.msk [vmem:[#allocation5] sm:$0xff] %vm338_vm2, %v1824_v0  ;;  %v166_v53 = vld [vmem:[%s2225_s3 + $0x8] sm:$0xff] }
  0x3a   :  { %1488 = vmatprep.mubr.msk.f32.mxu0 %vm1825_vm0, %v1824_v0  ;;  %1092 = vst.msk [vmem:[#allocation6] sm:$0xff] %vm338_vm2, %v1824_v0  ;;  %v175_v51 = vld [vmem:[#allocation14] sm:$0xff]  ;;  %v167_v54 = vld [vmem:[%s2225_s3 + $0x10] sm:$0xff]  ;;  %v168_v55 = vld [vmem:[%s2225_s3 + $0x18] sm:$0xff]  ;;  %vm891_vm7 = vcmask 258052   ;;  %vm1003_vm8 = vcmask 259077  }
  0x3b   :  { %1581 = vmatpush3.bf16.msra.mxu0 %v1984_v11  ;;  %v165_v52 = vld [vmem:[%s2225_s3] sm:$0xff]  ;;  %1463 = vmatprep.subr.mxu1 %v175_v51  ;;  %v170_v58 = vld [vmem:[%s2225_s3 + $0x28] sm:$0xff]  ;;  %v171_v59 = vld [vmem:[%s2225_s3 + $0x30] sm:$0xff]  ;;  %p1394_p10 = scmp.le.s32.totalorder %s2222_s0, 0 }
  0x3c   :  { %1582 = vmatprep.subr.bf16.mxu0 %v1826_v10  ;;  %1465 = vmatprep.mubr.msk.f32.mxu1 %vm91_vm1, %v165_v52  ;;  %v169_v56 = vld [vmem:[%s2225_s3 + $0x20] sm:$0xff]  ;;  %v172_v60 = vld [vmem:[%s2225_s3 + $0x38] sm:$0xff]  ;;  %v174_v62 = vld [vmem:[%s2225_s3 + $0x48] sm:$0xff]  ;;  %s2162_s21 = smov (!%p1394_p10), 0  }
  0x3d   :  { %1464 = vmatpush3.msra.mxu1 %v175_v51  ;;  %v173_v61 = vld [vmem:[%s2225_s3 + $0x40] sm:$0xff] }
  0x3e   :  { %1466 = vmatmul.mubr.msk.f32.vlgmr.msra.gmra.mrb[0].mxu1 %vm91_vm1, %v166_v53  ;;  %1591 = vmatprep.subr.bf16.mxu1 %v1826_v10  ;;  %v1370_v8 = vld [vmem:[%s2233_s11] ss:$0 sm:$0xff] }
  0x3f   :  { %1584 = vmatpush3.bf16.msra.mxu0 %v1995_v14  ;;  %1593 = vmatpush3.bf16.msra.mxu1 %v1984_v11 }
  0x40   :  { %1585 = vmatprep.subr.bf16.mxu0 %v1826_v10  ;;  %1468 = vmatprep.mubr.msk.f32.mxu1 %vm91_vm1, %v167_v54 }
  0x41   :  { %1594 = vmatprep.subr.bf16.mxu1 %v1826_v10 }
  0x42   :  { %1489 = vmatmul.mubr.f32.vlgmr.msra.gmra.mrb[2].mxu0 %v1824_v0  ;;  %1469 = vmatmul.mubr.msk.f32.gmra.mrb[2].mxu1 %vm91_vm1, %v168_v55 }
  0x43   :  { %1587 = vmatpush3.bf16.msra.mxu0 %v1984_v11  ;;  %1499 = vmatprep.mubr.msk.f32.mxu0 %vm1825_vm0, %v1824_v0 }
  0x44   :  { %1588 = vmatprep.subr.bf16.mxu0 %v1826_v10  ;;  %1471 = vmatprep.mubr.msk.f32.mxu1 %vm91_vm1, %v169_v56 }
  0x45   :  { %1596 = vmatpush3.bf16.msra.mxu1 %v1995_v14 }
  0x46   :  { %1603 = vmatprep.subr.bf16.mxu1 %v1826_v10  ;;  %1472 = vmatmul.mubr.msk.f32.gmra.mrb[4].mxu1 %vm91_vm1, %v170_v58 }
  0x47   :  { %1590 = vmatpush3.bf16.msra.mxu0 %v1995_v14  ;;  %1474 = vmatprep.mubr.msk.f32.mxu1 %vm91_vm1, %v171_v59 }
  0x48   :  { %1597 = vmatprep.subr.bf16.mxu0 %v1826_v10 }
  0x4a   :  { %1475 = vmatmul.mubr.msk.f32.gmra.mrb[6].mxu1 %vm91_vm1, %v172_v60 }
  0x4b   :  { %1477 = vmatprep.mubr.msk.f32.mxu1 %vm91_vm1, %v173_v61 }
  0x4e   :  { %1478 = vmatmul.mubr.msk.f32.gmra.mrb[8].mxu1 %vm91_vm1, %v174_v62 }
  0x4f   :  { %1510 = vmatprep.mubr.msk.f32.mxu1 %vm1825_vm0, %v1824_v0 }
 0x10c   :  { %v161_v15 = vpop.f32.mrb[0].mxu0 }
 0x10d   :  { %v1462_v16 = vpop.f32.mrb[1].mxu0  ;;  %v2010_v18 = vadd.f32 %v1368_v17, %v161_v15 }
 0x111   :  { %v1467_v9 = vpop.f32.mrb[0].mxu1 }
 0x112   :  { %v285_v12 = vadd.f32 %v1467_v9, %v1370_v8  ;;  %v279_v13 = vpop.f32.mrb[1].mxu1 }
 0x113   :  { %v280_v15 = vadd.f32 %v1370_v8, %v279_v13 }
 0x114   :  { %329 = vst [vmem:[#allocation3 + $0x8] sm:$0xff] %v285_v12 }
 0x115   :  { %v413_v19 = vpop.f32.mrb[2].mxu0  ;;  %328 = vst [vmem:[#allocation3] sm:$0xff] %v280_v15  ;;  %v1470_v16 = vpop.f32.mrb[2].mxu1 }
 0x116   :  { %v417_v20 = vadd.f32 %v413_v19, %v2010_v18  ;;  %v1490_v21 = vpop.f32.mrb[3].mxu0  ;;  %v295_v17 = vadd.f32 %v1470_v16, %v1370_v8  ;;  %v289_v19 = vpop.f32.mrb[3].mxu1 }
 0x118   :  { %1657 = vtanh.f32 %v417_v20  ;;  %v1381_v23 = vmul.f32 -1.442695, %v417_v20  ;;  %v290_v20 = vadd.f32 %v1370_v8, %v289_v19  ;;  %331 = vst [vmem:[#allocation3 + $0x18] sm:$0xff] %v295_v17 }
 0x119   :  { %v1473_v21 = vpop.f32.mrb[4].mxu1 }
 0x11a   :  { %1659 = vpow2.f32 %v1381_v23  ;;  %330 = vst [vmem:[#allocation3 + $0x10] sm:$0xff] %v290_v20  ;;  %v299_v23 = vpop.f32.mrb[5].mxu1 }
 0x122   :  { %v1658_v22 = vpop.eup %1657 }
 0x123   :  { %427 = vrot.lane.b32.xlu0 %v1658_v22, %s1827_s2  ;;  %v305_v22 = vadd.f32 %v1473_v21, %v1370_v8 }
 0x124   :  { %v1660_v24 = vpop.eup %1659 }
 0x125   :  { %v421_v25 = vadd.f32 1.0, %v1660_v24  ;;  %v300_v24 = vadd.f32 %v1370_v8, %v299_v23  ;;  %333 = vst [vmem:[#allocation3 + $0x28] sm:$0xff] %v305_v22 }
 0x127   :  { %1661 = vrcp.f32 %v421_v25  ;;  %332 = vst [vmem:[#allocation3 + $0x20] sm:$0xff] %v300_v24  ;;  %v1476_v25 = vpop.f32.mrb[6].mxu1 }
 0x131   :  { %v1662_v26 = vpop.eup %1661 }
 0x132   :  { %v425_v29 = vmul.f32 0.0, %v1662_v26 }
 0x195   :  { %v428_v27 = vpop.permute.xlu0 %427 }
 0x196   :  { %v430_v28 = vmul.f32 %v1662_v26, %v428_v27  ;;  %v309_v27 = vpop.f32.mrb[7].mxu1 }
 0x198   :  { %432 = vrot.lane.b32.xlu0 %v430_v28, %s1828_s6  ;;  %v310_v28 = vadd.f32 %v1370_v8, %v309_v27 }
 0x19a   :  { %334 = vst [vmem:[#allocation3 + $0x30] sm:$0xff] %v310_v28 }
 0x20a   :  { %v433_v30 = vpop.permute.xlu0 %432 }
 0x20b   :  { %v435_v31 = vadd.f32 %v433_v30, %v425_v29  ;;  %v1479_v29 = vpop.f32.mrb[8].mxu1 }
 0x20c   :  { %v325_v30 = vadd.f32 %v1479_v29, %v1370_v8 }
 0x20d   :  { %1663 = vtanh.f32 %v435_v31  ;;  %v532_v47 = vrot.slane %v435_v31, 7  ;;  %v319_v31 = vpop.f32.mrb[9].mxu1 }
 0x20e   :  { %337 = vst [vmem:[#allocation3 + $0x48] sm:$0xff] %v325_v30 }
 0x217   :  { %v1664_v32 = vpop.eup %1663 }
 0x218   :  { %438 = vrot.lane.b32.xlu1 %v1664_v32, %s1827_s2  ;;  %v320_v32 = vadd.f32 %v1370_v8, %v319_v31 }
 0x21a   :  { %336 = vst [vmem:[#allocation3 + $0x40] sm:$0xff] %v320_v32 }
 0x28a   :  { %v439_v33 = vpop.permute.xlu1 %438 }
 0x28b   :  { %v441_v34 = vmul.f32 %v1662_v26, %v439_v33  ;;  %v315_v26 = vadd.f32 %v1476_v25, %v1370_v8 }
 0x28d   :  { %443 = vrot.lane.b32.xlu1 %v441_v34, %s1828_s6  ;;  %335 = vst [vmem:[#allocation3 + $0x38] sm:$0xff] %v315_v26 }
 0x2ff   :  { %v444_v35 = vpop.permute.xlu1 %443 }
 0x300   :  { %447 = vst.msk [vmem:[#allocation2] sm:$0x1] %vm446_vm3, %v444_v35  ;;  %1500 = vmatmul.mubr.msk.f32.vlgmr.msra.gmra.mrb[4].mxu0 %vm338_vm2, %v444_v35 }
 0x301   :  { %1599 = vmatpush3.bf16.msra.mxu0 %v1984_v11  ;;  %1521 = vmatprep.mubr.msk.f32.mxu0 %vm1825_vm0, %v1824_v0 }
 0x302   :  { %1600 = vmatprep.subr.bf16.mxu0 %v1826_v10 }
 0x305   :  { %1602 = vmatpush3.bf16.msra.mxu0 %v1995_v14 }
 0x306   :  { %1609 = vmatprep.subr.bf16.mxu0 %v1826_v10 }
 0x3d3   :  { %v516_v36 = vpop.f32.mrb[4].mxu0 }
 0x3d4   :  { %v521_v37 = vrot.slane %v516_v36, 7  ;;  %v1501_v38 = vpop.f32.mrb[5].mxu0 }
 0x3d6   :  { %v523_v39 = vadd.f32 %v521_v37, %v2010_v18 }
 0x3d8   :  { %1665 = vtanh.f32 %v523_v39  ;;  %v1383_v41 = vmul.f32 -1.442695, %v523_v39 }
 0x3da   :  { %1667 = vpow2.f32 %v1383_v41 }
 0x3e2   :  { %v1666_v40 = vpop.eup %1665 }
 0x3e3   :  { %536 = vrot.lane.b32.xlu0 %v1666_v40, %s1827_s2 }
 0x3e4   :  { %v1668_v42 = vpop.eup %1667 }
 0x3e5   :  { %v527_v43 = vadd.f32 1.0, %v1668_v42 }
 0x3e7   :  { %1669 = vrcp.f32 %v527_v43 }
 0x3f1   :  { %v1670_v44 = vpop.eup %1669 }
 0x3f2   :  { %v534_v48 = vmul.f32 %v1670_v44, %v532_v47 }
 0x455   :  { %v537_v45 = vpop.permute.xlu0 %536 }
 0x456   :  { %v539_v46 = vmul.f32 %v1670_v44, %v537_v45 }
 0x458   :  { %541 = vrot.lane.b32.xlu1 %v539_v46, %s1828_s6 }
 0x4ca   :  { %v542_v49 = vpop.permute.xlu1 %541 }
 0x4cb   :  { %v2035_v50 = vadd.f32 %v542_v49, %v534_v48 }
 0x4cd   :  { %1671 = vtanh.f32 %v2035_v50  ;;  %v644_v45 = vrot.slane %v2035_v50, 7 }
 0x4d7   :  { %v1672_v57 = vpop.eup %1671 }
 0x4d8   :  { %547 = vrot.lane.b32.xlu0 %v1672_v57, %s1827_s2 }
 0x54a   :  { %v548_v63 = vpop.permute.xlu0 %547 }
 0x54b   :  { %v2086_v6 = vmul.f32 %v1670_v44, %v548_v63 }
 0x54d   :  { %v557_v7 = vrot.slane %v2086_v6, 1 }
 0x54f   :  { %558 = vrot.lane.b32.xlu1 %v557_v7, %s1828_s6 }
 0x5c1   :  { %v559_v33 = vpop.permute.xlu1 %558 }
 0x5c2   :  { %1511 = vmatmul.mubr.msk.f32.vlgmr.msra.gmra.mrb[10].mxu1 %vm338_vm2, %v559_v33 }
 0x5c3   :  { %1605 = vmatpush3.bf16.msra.mxu1 %v1984_v11  ;;  %1532 = vmatprep.mubr.msk.f32.mxu1 %vm1825_vm0, %v1824_v0 }
 0x5c4   :  { %1606 = vmatprep.subr.bf16.mxu1 %v1826_v10 }
 0x5c7   :  { %1608 = vmatpush3.bf16.msra.mxu1 %v1995_v14 }
 0x5c8   :  { %1615 = vmatprep.subr.bf16.mxu1 %v1826_v10 }
 0x695   :  { %v628_v34 = vpop.f32.mrb[10].mxu1 }
 0x696   :  { %v633_v35 = vrot.slane %v628_v34, 6  ;;  %v1512_v36 = vpop.f32.mrb[11].mxu1 }
 0x698   :  { %v635_v37 = vadd.f32 %v633_v35, %v2010_v18 }
 0x69a   :  { %1673 = vtanh.f32 %v635_v37  ;;  %v1385_v39 = vmul.f32 -1.442695, %v635_v37 }
 0x69c   :  { %1675 = vpow2.f32 %v1385_v39 }
 0x6a4   :  { %v1674_v38 = vpop.eup %1673 }
 0x6a5   :  { %648 = vrot.lane.b32.xlu0 %v1674_v38, %s1827_s2 }
 0x6a6   :  { %v1676_v40 = vpop.eup %1675 }
 0x6a7   :  { %v639_v41 = vadd.f32 1.0, %v1676_v40 }
 0x6a9   :  { %1677 = vrcp.f32 %v639_v41 }
 0x6b3   :  { %v1678_v42 = vpop.eup %1677 }
 0x6b4   :  { %v646_v46 = vmul.f32 %v1678_v42, %v644_v45 }
 0x717   :  { %v649_v43 = vpop.permute.xlu0 %648 }
 0x718   :  { %v651_v44 = vmul.f32 %v1678_v42, %v649_v43 }
 0x71a   :  { %653 = vrot.lane.b32.xlu1 %v651_v44, %s1828_s6 }
 0x78c   :  { %v654_v47 = vpop.permute.xlu1 %653 }
 0x78d   :  { %v656_v48 = vadd.f32 %v654_v47, %v646_v46 }
 0x78f   :  { %1679 = vtanh.f32 %v656_v48 }
 0x799   :  { %v1680_v49 = vpop.eup %1679 }
 0x79a   :  { %659 = vrot.lane.b32.xlu0 %v1680_v49, %s1827_s2 }
 0x80c   :  { %v660_v51 = vpop.permute.xlu0 %659 }
 0x80d   :  { %v2105_v52 = vmul.f32 %v1678_v42, %v660_v51 }
 0x80f   :  { %v669_v53 = vrot.slane %v2105_v52, 2 }
 0x811   :  { %670 = vrot.lane.b32.xlu1 %v669_v53, %s1828_s6 }
 0x883   :  { %v671_v54 = vpop.permute.xlu1 %670 }
 0x884   :  { %1522 = vmatmul.mubr.msk.f32.vlgmr.msra.gmra.mrb[6].mxu0 %vm338_vm2, %v671_v54 }
 0x885   :  { %1611 = vmatpush3.bf16.msra.mxu0 %v1984_v11  ;;  %1543 = vmatprep.mubr.msk.f32.mxu0 %vm1825_vm0, %v1824_v0 }
 0x886   :  { %1612 = vmatprep.subr.bf16.mxu0 %v1826_v10 }
 0x889   :  { %1614 = vmatpush3.bf16.msra.mxu0 %v1995_v14  ;;  %v756_v14 = vrot.slane %v656_v48, 7 }
 0x957   :  { %v740_v50 = vpop.f32.mrb[6].mxu0 }
 0x958   :  { %v745_v55 = vrot.slane %v740_v50, 5  ;;  %v1523_v56 = vpop.f32.mrb[7].mxu0 }
 0x95a   :  { %v747_v57 = vadd.f32 %v745_v55, %v2010_v18 }
 0x95c   :  { %1681 = vtanh.f32 %v747_v57  ;;  %v1387_v59 = vmul.f32 -1.442695, %v747_v57  ;;  %v1007_v57 = vld [vmem:[%s2229_s7 + $0x8] sm:$0xff] }
 0x95e   :  { %1683 = vpow2.f32 %v1387_v59  ;;  %v1008_v59 = vld [vmem:[%s2229_s7 + $0x10] sm:$0xff] }
 0x966   :  { %v1682_v58 = vpop.eup %1681 }
 0x967   :  { %760 = vrot.lane.b32.xlu0 %v1682_v58, %s1827_s2 }
 0x968   :  { %v1684_v60 = vpop.eup %1683 }
 0x969   :  { %v751_v11 = vadd.f32 1.0, %v1684_v60  ;;  %v1009_v60 = vld [vmem:[%s2229_s7 + $0x18] sm:$0xff] }
 0x96b   :  { %1685 = vrcp.f32 %v751_v11 }
 0x975   :  { %v1686_v61 = vpop.eup %1685 }
 0x976   :  { %v758_v7 = vmul.f32 %v1686_v61, %v756_v14 }
 0x9d9   :  { %v761_v62 = vpop.permute.xlu0 %760 }
 0x9da   :  { %v763_v63 = vmul.f32 %v1686_v61, %v761_v62 }
 0x9dc   :  { %765 = vrot.lane.b32.xlu1 %v763_v63, %s1828_s6 }
 0xa4e   :  { %v766_v8 = vpop.permute.xlu1 %765 }
 0xa4f   :  { %v768_v9 = vadd.f32 %v766_v8, %v758_v7  ;;  %v1392_v8 = vld [vmem:[%s2230_s8] ss:$0 sm:$0xff] }
 0xa51   :  { %1687 = vtanh.f32 %v768_v9  ;;  %v868_v30 = vrot.slane %v768_v9, 7 }
 0xa5b   :  { %v1688_v12 = vpop.eup %1687 }
 0xa5c   :  { %771 = vrot.lane.b32.xlu0 %v1688_v12, %s1827_s2 }
 0xace   :  { %v772_v13 = vpop.permute.xlu0 %771 }
 0xacf   :  { %v774_v15 = vmul.f32 %v1686_v61, %v772_v13 }
 0xad1   :  { %v781_v16 = vrot.slane %v774_v15, 3 }
 0xad3   :  { %782 = vrot.lane.b32.xlu1 %v781_v16, %s1828_s6 }
 0xb45   :  { %v783_v17 = vpop.permute.xlu1 %782 }
 0xb46   :  { %1533 = vmatmul.mubr.msk.f32.vlgmr.msra.gmra.mrb[12].mxu1 %vm338_vm2, %v783_v17 }
 0xb47   :  { %1554 = vmatprep.mubr.msk.f32.mxu1 %vm1825_vm0, %v1824_v0 }
 0xc19   :  { %v852_v19 = vpop.f32.mrb[12].mxu1 }
 0xc1a   :  { %v857_v20 = vrot.slane %v852_v19, 4  ;;  %v1534_v21 = vpop.f32.mrb[13].mxu1 }
 0xc1c   :  { %v859_v22 = vadd.f32 %v857_v20, %v2010_v18 }
 0xc1e   :  { %1689 = vtanh.f32 %v859_v22  ;;  %v1389_v24 = vmul.f32 -1.442695, %v859_v22 }
 0xc20   :  { %1691 = vpow2.f32 %v1389_v24 }
 0xc28   :  { %v1690_v23 = vpop.eup %1689 }
 0xc29   :  { %872 = vrot.lane.b32.xlu0 %v1690_v23, %s1827_s2 }
 0xc2a   :  { %v1692_v25 = vpop.eup %1691 }
 0xc2b   :  { %v863_v26 = vadd.f32 1.0, %v1692_v25 }
 0xc2d   :  { %1693 = vrcp.f32 %v863_v26 }
 0xc37   :  { %v1694_v27 = vpop.eup %1693 }
 0xc38   :  { %v870_v31 = vmul.f32 %v1694_v27, %v868_v30 }
 0xc9b   :  { %v873_v28 = vpop.permute.xlu0 %872 }
 0xc9c   :  { %v875_v29 = vmul.f32 %v1694_v27, %v873_v28 }
 0xc9e   :  { %877 = vrot.lane.b32.xlu1 %v875_v29, %s1828_s6 }
 0xd10   :  { %v878_v32 = vpop.permute.xlu1 %877 }
 0xd11   :  { %v880_v33 = vadd.f32 %v878_v32, %v870_v31 }
 0xd13   :  { %1695 = vtanh.f32 %v880_v33 }
 0xd1d   :  { %v1696_v34 = vpop.eup %1695 }
 0xd1e   :  { %883 = vrot.lane.b32.xlu0 %v1696_v34, %s1827_s2 }
 0xd90   :  { %v884_v35 = vpop.permute.xlu0 %883 }
 0xd91   :  { %v886_v36 = vmul.f32 %v1694_v27, %v884_v35 }
 0xd93   :  { %v893_v37 = vrot.slane %v886_v36, 4 }
 0xd95   :  { %894 = vrot.lane.b32.xlu1 %v893_v37, %s1828_s6 }
 0xe07   :  { %v895_v38 = vpop.permute.xlu1 %894 }
 0xe08   :  { %1544 = vmatmul.mubr.msk.f32.vlgmr.msra.gmra.mrb[8].mxu0 %vm338_vm2, %v895_v38 }
 0xedb   :  { %v964_v39 = vpop.f32.mrb[8].mxu0 }
 0xedc   :  { %v969_v40 = vrot.slane %v964_v39, 3  ;;  %v1545_v41 = vpop.f32.mrb[9].mxu0 }
 0xede   :  { %v971_v42 = vadd.f32 %v969_v40, %v2010_v18  ;;  %v980_v18 = vrot.slane %v880_v33, 7 }
 0xee0   :  { %1697 = vtanh.f32 %v971_v42  ;;  %v1391_v44 = vmul.f32 -1.442695, %v971_v42 }
 0xee2   :  { %1699 = vpow2.f32 %v1391_v44 }
 0xeea   :  { %v1698_v43 = vpop.eup %1697 }
 0xeeb   :  { %984 = vrot.lane.b32.xlu0 %v1698_v43, %s1827_s2 }
 0xeec   :  { %v1700_v45 = vpop.eup %1699 }
 0xeed   :  { %v975_v46 = vadd.f32 1.0, %v1700_v45 }
 0xeef   :  { %1701 = vrcp.f32 %v975_v46 }
 0xef9   :  { %v1702_v47 = vpop.eup %1701 }
 0xefa   :  { %v982_v51 = vmul.f32 %v1702_v47, %v980_v18 }
 0xf5d   :  { %v985_v48 = vpop.permute.xlu0 %984 }
 0xf5e   :  { %v987_v49 = vmul.f32 %v1702_v47, %v985_v48 }
 0xf60   :  { %989 = vrot.lane.b32.xlu1 %v987_v49, %s1828_s6 }
 0xf64   :  { %552 = vrot.lane.b32.xlu1 %v2086_v6, %s1828_s6  ;;  %v1006_v6 = vld [vmem:[%s2229_s7] sm:$0xff] }
 0xf65   :  { %v1616_v58 = vpack.c.bf16 %v1007_v57, %v1006_v6 }
 0xf67   :  { %1617 = vmatpush3.bf16.msra.mxu1 %v1616_v58 }
 0xf68   :  { %776 = vrot.lane.b32.xlu1 %v774_v15, %s1828_s6  ;;  %1618 = vmatprep.subr.bf16.mxu1 %v1826_v10 }
 0xfd2   :  { %v990_v53 = vpop.permute.xlu1 %989 }
 0xfd3   :  { %v992_v54 = vadd.f32 %v990_v53, %v982_v51 }
 0xfd5   :  { %1703 = vtanh.f32 %v992_v54 }
 0xfd6   :  { %v553_v50 = vpop.permute.xlu1 %552 }
 0xfd7   :  { %556 = vst.msk [vmem:[#allocation2] sm:$0x2] %vm555_vm4, %v553_v50 }
 0xfda   :  { %v777_v55 = vpop.permute.xlu1 %776 }
 0xfdb   :  { %780 = vst.msk [vmem:[#allocation2] sm:$0x8] %vm779_vm5, %v777_v55 }
 0xfdf   :  { %v1704_v56 = vpop.eup %1703 }
 0xfe0   :  { %995 = vrot.lane.b32.xlu0 %v1704_v56, %s1827_s2 }
 0xfe4   :  { %664 = vrot.lane.b32.xlu0 %v2105_v52, %s1828_s6  ;;  %v1619_v52 = vpack.c.bf16 %v1009_v60, %v1008_v59 }
 0xfe6   :  { %1620 = vmatpush3.bf16.msra.mxu1 %v1619_v52 }
 0xfe8   :  { %888 = vrot.lane.b32.xlu0 %v886_v36, %s1828_s6 }
0x1052   :  { %v996_v11 = vpop.permute.xlu0 %995 }
0x1053   :  { %v998_v61 = vmul.f32 %v1702_v47, %v996_v11 }
0x1055   :  { %1000 = vrot.lane.b32.xlu1 %v998_v61, %s1828_s6 }
0x1056   :  { %v665_v62 = vpop.permute.xlu0 %664 }
0x1057   :  { %668 = vst.msk [vmem:[#allocation2] sm:$0x4] %vm667_vm6, %v665_v62 }
0x105a   :  { %v889_v63 = vpop.permute.xlu0 %888 }
0x105b   :  { %892 = vst.msk [vmem:[#allocation2] sm:$0x10] %vm891_vm7, %v889_v63 }
0x10c7   :  { %v1001_v14 = vpop.permute.xlu1 %1000 }
0x10c8   :  { %1004 = vst.msk [vmem:[#allocation2] sm:$0x20] %vm1003_vm8, %v1001_v14 }
0x10cf   :  { %v1005_v7 = vld [vmem:[#allocation2] sm:$0xff] }
0x10d0   :  { %1555 = vmatmul.mubr.msk.f32.vlgmr.msra.gmra.mrb[14].mxu1 %vm338_vm2, %v1005_v7 }
0x119e   :  { %1365 = sbr.rel (%p1394_p10) target bundleno = 5234 (0x1472), region = 86 }
0x11a3   :  { %v1086_v9 = vpop.f32.mrb[14].mxu1 }
0x11a4   :  { %v2157_v12 = vadd.f32 %v1392_v8, %v1086_v9  ;;  %v1556_v13 = vpop.f32.mrb[15].mxu1 }
0x11a5 LB: > { %v1622_v15 = vpack.c.bf16 %v1959_v2, %v1954_v1  ;;  %v1829_v16 = vmov 0.0|0.0   ;;  %v1625_v17 = vpack.c.bf16 %v1969_v4, %v1964_v3  ;;  %vm1830_vm9 = vmmov 0   ;;  %v1108_v20 = vld [vmem:[#allocation4] sm:$0xff]  ;;  %s1395_s8 = sshll.u32 %s1819_s21, 3  ;;  %s1833_s23 = smov 64   ;;  %v1109_v27 = vld [vmem:[#allocation5] sm:$0xff]  ;;  %s1819_s21 = sphi %s2162_s21, %s1102_s21  }
0x11a6   : > { %1621 = vmatprep.subr.bf16.mxu0 %v1829_v16  ;;  %v1831_v19 = vmov 0.0   ;;  %s1106_s22 = scalar_lea.vmem [#allocation3], %s1395_s8  ;;  %v1832_v25 = vmov 0   ;;  %s1834_s24 = smov 32   ;;  %v1212_v31 = vstv %s1819_s21  ;;  %v1239_v49 = vld [vmem:[#allocation6] sm:$0xff] }
0x11a7   : > { %1623 = vmatpush3.bf16.msra.mxu0 %v1622_v15  ;;  %1565 = vmatprep.mubr.msk.f32.mxu0 %vm1830_vm9, %v1831_v19  ;;  %v1107_v21 = vld [vmem:[%s1106_s22] sm:$0xff]  ;;  %vm1213_vm10 = vcmp.lt.s32.totalorder %v1212_v31, %v1974_v5  ;;  %s1835_s25 = smov 96   ;;  %s1102_s21 = sadd.s32 1, %s1819_s21  }
0x11a8   : > { %1624 = vmatprep.subr.bf16.mxu0 %v1829_v16  ;;  %1705 = vset.pattern.permute.xlu1 %v1832_v25  ;;  %v1214_v35 = vsel %vm1213_vm10, 1, %v1832_v25  ;;  %p1101_p11 = scmp.ge.s32.totalorder %s1102_s21, %s2222_s0 }
0x11a9   : > { %1706 = vset.pattern.permute.xlu0 %v1832_v25 }
0x11ab   : > { %1626 = vmatpush3.bf16.msra.mxu0 %v1625_v17 }
0x11ae   : > { %1566 = vmatmul.mubr.msk.f32.vlgmr.msra.gmra.mrb[0].mxu0 %vm338_vm2, %v1108_v20 }
0x1281   : > { %v1179_v22 = vpop.f32.mrb[0].mxu0 }
0x1282   : > { %v1183_v23 = vadd.f32 %v1179_v22, %v1107_v21  ;;  %v1567_v24 = vpop.f32.mrb[1].mxu0 }
0x1284   : > { %1707 = vtanh.f32 %v1183_v23  ;;  %v1397_v28 = vmul.f32 -1.442695, %v1183_v23 }
0x1286   : > { %1709 = vpow2.f32 %v1397_v28 }
0x128e   : > { %v1708_v26 = vpop.eup %1707 }
0x128f   : > { %1197 = vrot.lane.b32.xlu0 %v1708_v26, %s1833_s23 }
0x1290   : > { %v1710_v29 = vpop.eup %1709 }
0x1291   : > { %v1187_v30 = vadd.f32 1.0, %v1710_v29 }
0x1293   : > { %1192 = vrot.lane.b32.xlu0 %v1109_v27, %s1834_s24  ;;  %1711 = vrcp.f32 %v1187_v30 }
0x129d   : > { %v1712_v32 = vpop.eup %1711 }
0x1301   : > { %v1198_v33 = vpop.permute.xlu0 %1197 }
0x1302   : > { %v1200_v34 = vmul.f32 %v1712_v32, %v1198_v33 }
0x1304   : > { %1202 = vrot.lane.b32.xlu1 %v1200_v34, %s1834_s24 }
0x1305   : > { %v1193_v36 = vpop.permute.xlu0 %1192 }
0x1306   : > { %v1195_v37 = vmul.f32 %v1712_v32, %v1193_v36 }
0x1308   : > { %1216 = vperm.xlu1 %1705, %v1214_v35  }
0x130c   : > { %1219 = vrot.lane.b32.xlu1 %v1108_v20, %s1835_s25 }
0x1376   : > { %v1203_v38 = vpop.permute.xlu1 %1202 }
0x1377   : > { %v1205_v39 = vadd.f32 %v1203_v38, %v1195_v37 }
0x1379   : > { %1713 = vtanh.f32 %v1205_v39 }
0x1383   : > { %v1714_v40 = vpop.eup %1713 }
0x1384   : > { %1208 = vrot.lane.b32.xlu0 %v1714_v40, %s1833_s23 }
0x1387   : > { %v1217_v41 = vpop.permute.xlu1 %1216 }
0x1388   : > { %1230 = vrot.lane.b32.xlu0 %v1109_v27, %s1834_s24  ;;  %vm1218_vm11 = vcmp.eq.s32.totalorder %v1217_v41, 1 }
0x138b   : > { %v1220_v43 = vpop.permute.xlu1 %1219 }
0x13f6   : > { %v1209_v42 = vpop.permute.xlu0 %1208 }
0x13f7   : > { %v1211_v44 = vmul.f32 %v1712_v32, %v1209_v42 }
0x13f9   : > { %v1240_v45 = vsel %vm1218_vm11, %v1211_v44, 0.0  ;;  %v1222_v46 = vsel %vm1218_vm11, %v1211_v44, %v1220_v43 }
0x13fa   : > { %1242 = vrot.lane.b32.xlu1 %v1240_v45, %s1834_s24  ;;  %1224 = vrot.lane.b32.xlu0 %v1222_v46, %s1834_s24  ;;  %v1231_v47 = vpop.permute.xlu0 %1230 }
0x13fb   : > { %v1233_v48 = vsel %vm1218_vm11, %v1205_v39, %v1231_v47 }
0x13fe   : > { %1235 = vrot.lane.b32.xlu1 %v1233_v48, %s1835_s25 }
0x146b   :  { %1104 = sbr.rel (!%p1101_p11) target bundleno = 4517 (0x11a5), region = 92 }
0x146c   : > { %v1243_v18 = vpop.permute.xlu1 %1242  ;;  %v1225_v51 = vpop.permute.xlu0 %1224 }
0x146d   : > { %v1245_v53 = vadd.f32 %v1243_v18, %v1239_v49  ;;  %1227 = vst.msk [vmem:[#allocation4] sm:$0xff] %vm338_vm2, %v1225_v51 }
0x146f   : > { %1246 = vst.msk [vmem:[#allocation6] sm:$0xff] %vm338_vm2, %v1245_v53 }
0x1470   : > { %v1236_v54 = vpop.permute.xlu1 %1235 }
0x1471   : > { %1238 = vst.msk [vmem:[#allocation5] sm:$0xff] %vm338_vm2, %v1236_v54 }
0x1472 PF:  { %1627 = vmatprep.subr.bf16.mxu0 %v1826_v10  ;;  %v1248_v50 = vld [vmem:[%s2234_s12] sm:$0xff]  ;;  %v1249_v55 = vld [vmem:[%s2234_s12 + $0x8] sm:$0xff]  ;;  %v1250_v56 = vld [vmem:[%s2234_s12 + $0x10] sm:$0xff]  ;;  %1576 = vmatprep.mubr.msk.f32.mxu0 %vm1825_vm0, %v1824_v0 }
0x1473   :  { %v1628_v6 = vpack.c.bf16 %v1249_v55, %v1248_v50  ;;  %v1251_v1 = vld [vmem:[%s2234_s12 + $0x18] sm:$0xff]  ;;  %v1398_v4 = vld [vmem:[%s2235_s13] ss:$0 sm:$0xff]  ;;  %s1836_s12 = smov [#allocation15]  }
0x1474   :  { %v1631_v2 = vpack.c.bf16 %v1251_v1, %v1250_v56  ;;  %s1351_s17 = sshll.u32 %s1836_s12, 4  ;;  %s1352_s17 = int_to_ptr.vmem [resolvable:$true] %s1351_s17 }
0x1475   :  { %1629 = vmatpush3.bf16.msra.mxu0 %v1628_v6  ;;  %s1785_s13 = scalar_lea.vmem %s1352_s17, 128  ;;  %p1790_p13 = scmp.lt.s32.totalorder %s1352_s17, %s1352_s17 }
0x1476   :  { %1630 = vmatprep.subr.bf16.mxu0 %v1826_v10  ;;  %v1247_v3 = vld [vmem:[#allocation6] sm:$0xff]  ;;  %p1786_p12 = scmp.ne.s32.totalorder %s1352_s17, %s1785_s13  ;;  %p1791_p0 = scmp.lt.s32.totalorder %s1785_s13, %s1785_s13 }
0x1478   :  { %p1792_p1 = por %p1791_p0, %p1790_p13 }
0x1479   :  { %1632 = vmatpush3.bf16.msra.mxu0 %v1631_v2 }
0x147a   :  { %p1793_p2 = pnand %p1792_p1, %p1786_p12 }
0x147c   :  { %1577 = vmatmul.mubr.msk.f32.vlgmr.msra.gmra.mrb[0].mxu0 %vm338_vm2, %v1247_v3 }
0x154f   :  { %v1328_v5 = vpop.f32.mrb[0].mxu0 }
0x1550   :  { %v1329_v57 = vadd.f32 %v1398_v4, %v1328_v5  ;;  %v1578_v0 = vpop.f32.mrb[1].mxu0 }
0x1552   :  { %v1332_v58 = vadd.f32 %v1329_v57, %v2157_v12 }
0x1554   :  { %1333 = vmax.xlane.f32.xlu0 %v1332_v58 }
0x15e1   :  { %v1334_v59 = vpop.xlane.xlu0 %1333 }
0x15e2   :  { %v1335_v60 = vsub.f32 %v1332_v58, %v1334_v59 }
0x15e4   :  { %v1336_v52 = vmul.f32 1.442695, %v1335_v60 }
0x15e6   :  { %1715 = vpow2.f32 %v1336_v52 }
0x15f0   :  { %v1716_v11 = vpop.eup %1715 }
0x15f1   :  { %1338 = vadd.xlane.f32.xlu0 %v1716_v11 }
0x167e   :  { %v1339_v10 = vpop.xlane.xlu0 %1338 }
0x167f   :  { %1717 = vlog2.f32 %v1339_v10 }
0x1689   :  { %v1718_v61 = vpop.eup %1717 }
0x168a   :  { %v1341_v62 = vmul.f32 0.6931472, %v1718_v61 }
0x168c   :  { %v1342_v63 = vadd.f32 %v1341_v62, %v1334_v59 }
0x168e   :  { %v1343_v14 = vsub.f32 %v1332_v58, %v1342_v63 }
0x1690   :  { %1344 = vst [vmem:[#allocation15] sm:$0xff] %v1343_v14 }
0x1691   :  { %1796 = shalt.err (!%p1793_p2)
}
0x1692   :  { %s1797_s20 = scalar_lea.hbm %s2236_s14, 128 }
0x1693   :  { %p1798_p3 = scmp.ne.s32.totalorder %s2236_s14, %s1797_s20  ;;  %p1801_p4 = scmp.lt.u32.totalorder %s1797_s20, %s2236_s14 }
0x1695   :  { %p1803_p5 = pnand %p1801_p4, %p1798_p3 }
0x1697   :  { %1806 = shalt.err (!%p1803_p5)
}
0x1698   :  { %1354 = dma.vmem_to_hbm [thread:$0]  %s1352_s17, 128, %s2236_s14, [#allocation11]  }
0x1699   :  { %1815 = dma.done.wait [#allocation11], 128  }
0x169a   :  { %1816 = vsyncadd [#allocation11], 4294967168 }
0x169b   :  { %1358 = vsyncpa [#allocation10], 1 }
0x169c   :  { %1359 = vsyncpa [#allocation13], 1 }
0x169d   :  { %1360 = vsyncpa [#allocation11], 1 }

</bundles_post_ra>
